<compile_context>
chip_gen: v7x
topology: tpu7x:2x2x1
jax: 0.10.0
libtpu: 0.0.40
codegen_flags: <defaults>
</compile_context>

<pallas_src>
import functools
import math

import jax
import jax.numpy as jnp
from jax.experimental import pallas as pl
from jax.experimental.pallas import tpu as pltpu


# ------------------------- per-generation configuration ----------------------

def _device_kind() -> str:
    try:
        return jax.devices()[0].device_kind.lower()
    except Exception:
        return ""


_KIND = _device_kind()
# v5e/v5p/v6e: 128 MiB VMEM, single TensorCore.  v7x: 64 MiB, 2 TCs.  Unknown
# targets fall back to the conservative (v7x-safe) configuration.
_BIG_VMEM = ("v5" in _KIND) or ("v6" in _KIND)
_VMEM_LIMIT = (100 if _BIG_VMEM else 48) * 1024 * 1024
_SPLIT_FC_OUT = not _BIG_VMEM          # OUT split only pays off with 2 TCs


# --------------------------- padded merged layout ----------------------------
# Conv activations live in (N, H*(W+8), C): each image row is stored with one
# zero column on the left and seven on the right (padded width is a multiple
# of 8), rows merged into one axis.  Conv kernels read AND write this layout
# directly in bf16, so no XLA pad/cast runs between conv layers.

def to_padded(x_nhwc):
    n, h, w, c = x_nhwc.shape
    return jnp.pad(x_nhwc, ((0, 0), (0, 0), (1, 7), (0, 0))).reshape(
        n, h * (w + 8), c)


def from_padded(xm, h, w):
    n = xm.shape[0]
    c = xm.shape[-1]
    return xm.reshape(n, h, w + 8, c)[:, :, 1:1 + w, :]


# ----------------------------- 3x3 conv kernel ------------------------------

def _conv3x3_kernel(t_ref, c_ref, btm_ref, w_ref, b_ref, o_ref, *scratch,
                    th, wp, w, relu, pool, emit_padded):
    # t_ref   : (1, wp, cin)        padded row above the tile (clamped)
    # c_ref   : (1, th*wp, cin)     row tile, rows merged with padded width
    # btm_ref : (1, wp, cin)        padded row below the tile (clamped)
    # w_ref   : (3, 3*cin, cout)    bf16, contraction ordered [dx, cin]
    # b_ref   : (1, cout) f32
    # o_ref   : (1, rows*(wo+8), cout) bf16 padded-merged, or
    #           (1, rows, wo, cout) bf16 if emit_padded=False
    cin = c_ref.shape[2]
    cout = b_ref.shape[1]
    mw = (th + 2) * wp
    i = pl.program_id(1)

    # 1-row halos, zero-masked at the image boundary; everything the MXU
    # touches is bf16 (native rate, half the VMEM traffic).
    top = t_ref[0].astype(jnp.bfloat16)
    top = jnp.where(i == 0, jnp.zeros_like(top), top)
    bot = btm_ref[0].astype(jnp.bfloat16)
    bot = jnp.where(i == pl.num_programs(1) - 1, jnp.zeros_like(bot), bot)
    wext = jnp.concatenate(
        [top, c_ref[0].astype(jnp.bfloat16), bot,
         jnp.zeros((2, cin), jnp.bfloat16)], axis=0)          # (mw + 2, cin)

    acc = None
    if cin % 128 == 0:
        # Fold the three dx taps into the contraction dim (K = 3*cin); the dy
        # taps are 8-aligned row-offset slices of x3 -> 3 MXU matmuls / tile.
        # Built once per (image, row-tile): there is no cout grid axis.
        x3 = jnp.concatenate([wext[0:mw], wext[1:mw + 1], wext[2:mw + 2]],
                             axis=1)                          # (mw, 3*cin)
        for dy in range(3):
            d = jnp.dot(x3[dy * wp:dy * wp + th * wp, :], w_ref[dy],
                        preferred_element_type=jnp.float32)
            acc = d if acc is None else acc + d
    else:
        # Small-Cin layers (conv1-3): 9 shifted matmuls with K = cin (shifts
        # are plain static slices of the merged operand, no reshapes).
        for dy in range(3):
            wv = w_ref[dy]                                    # (3*cin, cout)
            for dx in range(3):
                s = dy * wp + dx
                d = jnp.dot(wext[s:s + th * wp, :],
                            wv[dx * cin:(dx + 1) * cin, :],
                            preferred_element_type=jnp.float32)
                acc = d if acc is None else acc + d

    # Epilogue on the (th, w, cout) data slice only (pad columns dropped).
    y = acc.reshape(th, wp, cout)[:, :w, :] + b_ref[...]
    if relu:
        y = jnp.maximum(y, 0.0)
    if pool:
        # Fused 2x2 / stride-2 max pool: rows via a leading-axis reduce of the
        # value, columns via even/odd strided reads through a VMEM scratch
        # (pl.ds strided ref reads are reliably lowered).
        pool_ref = scratch[0]
        pool_ref[...] = jnp.max(y.reshape(th // 2, 2, w, cout), axis=1)
        ev = pool_ref[:, pl.ds(0, w // 2, stride=2), :]
        od = pool_ref[:, pl.ds(1, w // 2, stride=2), :]
        y = jnp.maximum(ev, od)                               # (th/2, w/2, cout)

    yb = y.astype(o_ref.dtype)
    if emit_padded:
        rows, wo = yb.shape[0], yb.shape[1]
        yp = jnp.concatenate(
            [jnp.zeros((rows, 1, cout), yb.dtype), yb,
             jnp.zeros((rows, 7, cout), yb.dtype)], axis=1)   # (rows, wo+8, cout)
        o_ref[0] = yp.reshape(rows * (wo + 8), cout)
    else:
        o_ref[0] = yb


def conv3x3(xm, h, w, weight, bias, *, relu=False, pool=False, th=32,
            emit_padded=True):
    """3x3 'same' conv (+ optional fused ReLU and 2x2/stride-2 max pool).

    xm     : (N, H*(W+8), Cin) padded-merged activations (f32 or bf16).
    weight : (Cout, Cin, 3, 3) PyTorch layout (any float dtype).
    bias   : (Cout,) f32.
    Returns (N, Ho*(Wo+8), Cout) bf16 padded-merged if emit_padded else
            (N, Ho, Wo, Cout) bf16.
    """
    n = xm.shape[0]
    cin = xm.shape[2]
    cout = weight.shape[0]
    wp = w + 8
    assert xm.shape[1] == h * wp and weight.shape[1] == cin
    assert h % th == 0 and w % 8 == 0
    if pool:
        assert th % 2 == 0 and w % 2 == 0

    # (Cout, Cin, 3, 3) -> (3, 3*Cin, Cout), contraction ordered [dx, cin].
    w3 = jnp.transpose(weight, (2, 3, 1, 0)).reshape(3, 3 * cin, cout)
    w3 = w3.astype(jnp.bfloat16)
    b2 = bias.reshape(1, cout).astype(jnp.float32)

    rows = th // 2 if pool else th           # output rows per tile
    ho = h // 2 if pool else h
    wo = w // 2 if pool else w
    if emit_padded:
        out_shape = jax.ShapeDtypeStruct((n, ho * (wo + 8), cout), jnp.bfloat16)
        out_spec = pl.BlockSpec((1, rows * (wo + 8), cout),
                                lambda nn, i: (nn, i, 0))
    else:
        out_shape = jax.ShapeDtypeStruct((n, ho, wo, cout), jnp.bfloat16)
        out_spec = pl.BlockSpec((1, rows, wo, cout),
                                lambda nn, i: (nn, i, 0, 0))

    scratch = [pltpu.VMEM((rows, w, cout), jnp.float32)] if pool else []
    kernel = functools.partial(_conv3x3_kernel, th=th, wp=wp, w=w,
                               relu=relu, pool=pool, emit_padded=emit_padded)

    return pl.pallas_call(
        kernel,
        out_shape=out_shape,
        grid_spec=pltpu.PrefetchScalarGridSpec(
            num_scalar_prefetch=0,
            grid=(n, h // th),
            in_specs=[
                # 1-row top halo (clamped; zero-masked in-kernel at i == 0).
                pl.BlockSpec((1, wp, cin),
                             lambda nn, i: (nn, jnp.maximum(i * th - 1, 0), 0)),
                # Row tile (merged row*width layout).
                pl.BlockSpec((1, th * wp, cin), lambda nn, i: (nn, i, 0)),
                # 1-row bottom halo (clamped; zero-masked at i == last).
                pl.BlockSpec((1, wp, cin),
                             lambda nn, i: (nn, jnp.minimum(i * th + th, h - 1), 0)),
                # Full-Cout weights / bias: constant block across the grid.
                pl.BlockSpec((3, 3 * cin, cout), lambda nn, i: (0, 0, 0)),
                pl.BlockSpec((1, cout), lambda nn, i: (0, 0)),
            ],
            out_specs=out_spec,
            scratch_shapes=scratch,
        ),
        compiler_params=pltpu.CompilerParams(
            dimension_semantics=("parallel", "parallel"),
            vmem_limit_bytes=_VMEM_LIMIT),
    )(xm, xm, xm, w3, b2)


# ------------------------------- linear kernel ------------------------------

def _linear_kernel(x_ref, w_ref, b_ref, o_ref, acc_ref, *, relu):
    k = pl.program_id(1)

    @pl.when(k == 0)
    def _():
        # Initialise the accumulator with the bias (no epilogue add).
        acc_ref[...] = jnp.broadcast_to(b_ref[...], acc_ref.shape)

    acc_ref[...] += jnp.dot(x_ref[...].astype(jnp.bfloat16), w_ref[...],
                            preferred_element_type=jnp.float32)

    @pl.when(k == pl.num_programs(1) - 1)
    def _():
        r = acc_ref[...]
        if relu:
            r = jnp.maximum(r, 0.0)
        o_ref[...] = r.astype(o_ref.dtype)


def linear(x, w, b, *, relu=False, tk_max=16384, split_out=False):
    """y = x @ w + b (+ optional ReLU).  x: (N, K) f32/bf16, w: (K, OUT)."""
    n, kdim = x.shape
    out = w.shape[1]
    tk = min(tk_max, kdim)
    assert kdim % tk == 0
    # The OUT split only helps v7x's 2 TensorCores; on v5e/v6e it just doubles
    # grid steps, so it is gated by split_out (set per detected generation).
    tn = out // 2 if (split_out and out % 256 == 0) else out
    w = w.astype(jnp.bfloat16)
    b2 = b.reshape(1, out).astype(jnp.float32)
    kernel = functools.partial(_linear_kernel, relu=relu)
    return pl.pallas_call(
        kernel,
        out_shape=jax.ShapeDtypeStruct((n, out), jnp.float32),
        grid_spec=pltpu.PrefetchScalarGridSpec(
            num_scalar_prefetch=0,
            grid=(out // tn, kdim // tk),
            in_specs=[
                pl.BlockSpec((n, tk), lambda j, k: (0, k)),
                pl.BlockSpec((tk, tn), lambda j, k: (k, j)),
                pl.BlockSpec((1, tn), lambda j, k: (0, j)),
            ],
            out_specs=pl.BlockSpec((n, tn), lambda j, k: (0, j)),
            scratch_shapes=[pltpu.VMEM((n, tn), jnp.float32)],
        ),
        compiler_params=pltpu.CompilerParams(
            dimension_semantics=("parallel", "arbitrary"),
            vmem_limit_bytes=_VMEM_LIMIT),
    )(x, w, b2)


# ------------------------------- model glue ---------------------------------

_CONV_CH = [(3, 32), (32, 64), (64, 128), (128, 256), (256, 512), (512, 1024)]
_FC_DIMS = [(1024 * 16 * 16, 1024), (1024, 512), (512, 128), (128, 73)]


def init_params(key):
    """He-init params.  Weights stored bf16 (MXU-native, halves the weight
    HBM stream -- fc1 alone is 0.5 GiB); biases stay f32."""
    # TODO(synk): int8 (v5e/v6e) / fp8 (v7x) weight quantization for fc1 and
    # conv4-6 would halve the dominant weight stream again but needs an
    # accuracy check, so it is not enabled here.
    params = {}
    keys = jax.random.split(key, len(_CONV_CH) + len(_FC_DIMS))
    for i, (cin, cout) in enumerate(_CONV_CH):
        std = math.sqrt(2.0 / (cin * 9))
        params[f"conv{i + 1}_w"] = (jax.random.normal(
            keys[i], (cout, cin, 3, 3), jnp.float32) * std).astype(jnp.bfloat16)
        params[f"conv{i + 1}_b"] = jnp.zeros((cout,), jnp.float32)
    for i, (kin, kout) in enumerate(_FC_DIMS):
        std = math.sqrt(2.0 / kin)
        params[f"fc{i + 1}_w"] = (jax.random.normal(
            keys[len(_CONV_CH) + i], (kin, kout), jnp.float32) * std
        ).astype(jnp.bfloat16)
        params[f"fc{i + 1}_b"] = jnp.zeros((kout,), jnp.float32)
    return params


def cnn_trip_forward(params, x_nchw):
    # TODO(synk): nn.Dropout(p=0.2) layers are identity in inference mode;
    # training-mode stochastic dropout is not implemented.
    x = jnp.transpose(x_nchw, (0, 2, 3, 1))        # NCHW -> NHWC
    xm = to_padded(x)                              # (N, 256*264, 3) f32
    xm = conv3x3(xm, 256, 256, params["conv1_w"], params["conv1_b"])
    xm = conv3x3(xm, 256, 256, params["conv2_w"], params["conv2_b"],
                 relu=True, pool=True)             # (N, 128*136, 64) bf16
    xm = conv3x3(xm, 128, 128, params["conv3_w"], params["conv3_b"])
    xm = conv3x3(xm, 128, 128, params["conv4_w"], params["conv4_b"],
                 relu=True, pool=True)             # (N, 64*72, 256)
    xm = conv3x3(xm, 64, 64, params["conv5_w"], params["conv5_b"],
                 relu=True, pool=True)             # (N, 32*40, 512)
    x6 = conv3x3(xm, 32, 32, params["conv6_w"], params["conv6_b"],
                 relu=True, pool=True, th=16, emit_padded=False)  # (N,16,16,1024)
    n = x6.shape[0]
    xf = jnp.transpose(x6, (0, 3, 1, 2)).reshape(n, -1)  # PyTorch NCHW flatten
    xf = linear(xf, params["fc1_w"], params["fc1_b"], relu=True,
                split_out=_SPLIT_FC_OUT)
    xf = linear(xf, params["fc2_w"], params["fc2_b"], relu=True)
    xf = linear(xf, params["fc3_w"], params["fc3_b"], relu=True)
    xf = linear(xf, params["fc4_w"], params["fc4_b"], relu=False)
    return xf                                      # (N, 73) f32


# --------------------------- small correctness checks ------------------------

def _conv_ref(x, w, b, relu, pool):
    y = jax.lax.conv_general_dilated(
        x.astype(jnp.bfloat16),
        jnp.transpose(w, (2, 3, 1, 0)).astype(jnp.bfloat16),   # HWIO
        window_strides=(1, 1), padding="SAME",
        dimension_numbers=("NHWC", "HWIO", "NHWC"),
        preferred_element_type=jnp.float32)
    y = y + b.reshape(1, 1, 1, -1)
    if relu:
        y = jnp.maximum(y, 0.0)
    if pool:
        n, h, wd, c = y.shape
        y = jnp.max(y.reshape(n, h // 2, 2, wd // 2, 2, c), axis=(2, 4))
    return y


def _linear_ref(x, w, b, relu):
    y = jnp.dot(x.astype(jnp.bfloat16), w.astype(jnp.bfloat16),
                preferred_element_type=jnp.float32) + b
    return jnp.maximum(y, 0.0) if relu else y


def _check(got, ref, name):
    got = jnp.asarray(got, jnp.float32)
    ref = jnp.asarray(ref, jnp.float32)
    assert got.shape == ref.shape, (name, got.shape, ref.shape)
    assert jnp.allclose(got, ref, rtol=5e-2, atol=5e-2), (
        name, float(jnp.max(jnp.abs(got - ref))))


def _self_test():
    key = jax.random.PRNGKey(0)
    k1, k2, k3, k4, k5, k6, k7 = jax.random.split(key, 7)

    # Small-Cin (unfolded) path: multiple row tiles, both pool variants,
    # bf16 padded-merged output.
    xc = jax.random.normal(k1, (2, 32, 16, 8), jnp.float32)
    wc = (jax.random.normal(k2, (16, 8, 3, 3), jnp.float32) * 0.2
          ).astype(jnp.bfloat16)
    bc = jax.random.normal(k3, (16,), jnp.float32) * 0.1
    got = conv3x3(to_padded(xc), 32, 16, wc, bc, relu=True, pool=True, th=8)
    _check(from_padded(got, 16, 8), _conv_ref(xc, wc, bc, True, True),
           "conv small-cin pool")
    got = conv3x3(to_padded(xc), 32, 16, wc, bc, th=8)
    _check(from_padded(got, 32, 16), _conv_ref(xc, wc, bc, False, False),
           "conv small-cin plain")

    # Folded (Cin % 128 == 0) path, padded and unpadded outputs (conv4-6).
    xf = jax.random.normal(k4, (1, 16, 8, 128), jnp.float32)
    wf = (jax.random.normal(k5, (128, 128, 3, 3), jnp.float32) * 0.05
          ).astype(jnp.bfloat16)
    bf = jnp.full((128,), 0.1, jnp.float32)
    ref = _conv_ref(xf, wf, bf, True, True)
    got = conv3x3(to_padded(xf), 16, 8, wf, bf, relu=True, pool=True, th=8)
    _check(from_padded(got, 8, 4), ref, "conv folded padded")
    got = conv3x3(to_padded(xf), 16, 8, wf, bf, relu=True, pool=True, th=8,
                  emit_padded=False)
    _check(got, ref, "conv folded unpadded")

    # Linear: multiple K tiles; with and without the OUT split.
    xl = jax.random.normal(k6, (2, 1024), jnp.float32)
    wl = (jax.random.normal(k7, (1024, 256), jnp.float32) * 0.05
          ).astype(jnp.bfloat16)
    bl = jnp.full((256,), 0.3, jnp.float32)
    ref = _linear_ref(xl, wl, bl, True)
    _check(linear(xl, wl, bl, relu=True, tk_max=256, split_out=False), ref,
           "linear")
    _check(linear(xl, wl, bl, relu=True, tk_max=512, split_out=True), ref,
           "linear split")


if __name__ == "__main__":
    _self_test()

    key = jax.random.PRNGKey(0)
    pkey, xkey = jax.random.split(key)
    params = init_params(pkey)
    # Smallest input consistent with fc1 = Linear(1024*16*16, 1024): 256x256
    # spatial (four 2x2 pools -> 16x16), batch of 2.
    x = jax.random.normal(xkey, (2, 3, 256, 256), jnp.float32)
    fwd = jax.jit(cnn_trip_forward)
    y = jax.block_until_ready(fwd(params, x))
    assert y.shape == (2, 73), y.shape
    assert bool(jnp.all(jnp.isfinite(y)))
    print("KERNEL_OK")
</pallas_src>

<mosaic_0001>
module attributes {stable_mosaic.version = 11 : i64} {
  func.func @_conv3x3_kernel(%arg0: i32, %arg1: i32, %arg2: memref<1x24x8xf32, #tpu.memory_space<vmem>>, %arg3: memref<1x192x8xf32, #tpu.memory_space<vmem>>, %arg4: memref<1x24x8xf32, #tpu.memory_space<vmem>>, %arg5: memref<3x24x16xbf16, #tpu.memory_space<vmem>>, %arg6: memref<1x16xf32, #tpu.memory_space<vmem>>, %arg7: memref<1x64x16xbf16, #tpu.memory_space<vmem>>, %arg8: memref<4x16x16xf32, #tpu.memory_space<vmem>>) attributes {dimension_semantics = [#tpu.dimension_semantics<parallel>, #tpu.dimension_semantics<parallel>], iteration_bounds = array<i64: 2, 4>, scalar_prefetch = 0 : i64, scratch_operands = 1 : i64, tpu.core_type = #tpu.core_type<tc>, window_params = [{transform_indices = @transform_0, window_bounds = array<i64: 1, 24, 8>}, {transform_indices = @transform_1, window_bounds = array<i64: 1, 192, 8>}, {transform_indices = @transform_2, window_bounds = array<i64: 1, 24, 8>}, {pipeline_mode = #tpu.pipeline_mode<synchronous>, transform_indices = @transform_3, window_bounds = array<i64: 3, 24, 16>}, {pipeline_mode = #tpu.pipeline_mode<synchronous>, transform_indices = @transform_4, window_bounds = array<i64: 1, 16>}, {transform_indices = @transform_5, window_bounds = array<i64: 1, 64, 16>}]} {
    %c0 = arith.constant 0 : index
    %c0_0 = arith.constant 0 : index
    %c0_1 = arith.constant 0 : index
    %0 = vector.load %arg2[%c0, %c0_0, %c0_1] : memref<1x24x8xf32, #tpu.memory_space<vmem>>, vector<1x24x8xf32>
    %1 = vector.shape_cast %0 : vector<1x24x8xf32> to vector<24x8xf32>
    %2 = arith.truncf %1 : vector<24x8xf32> to vector<24x8xbf16>
    %c0_i32 = arith.constant 0 : i32
    %3 = arith.cmpi eq, %arg1, %c0_i32 : i32
    %cst = arith.constant 0.000000e+00 : bf16
    %4 = vector.broadcast %cst : bf16 to vector<24x8xbf16>
    %5 = arith.select %3, %4, %2 : vector<24x8xbf16>
    %c0_2 = arith.constant 0 : index
    %c0_3 = arith.constant 0 : index
    %c0_4 = arith.constant 0 : index
    %6 = vector.load %arg4[%c0_2, %c0_3, %c0_4] : memref<1x24x8xf32, #tpu.memory_space<vmem>>, vector<1x24x8xf32>
    %7 = vector.shape_cast %6 : vector<1x24x8xf32> to vector<24x8xf32>
    %8 = arith.truncf %7 : vector<24x8xf32> to vector<24x8xbf16>
    %c3_i32 = arith.constant 3 : i32
    %9 = arith.cmpi eq, %arg1, %c3_i32 : i32
    %cst_5 = arith.constant 0.000000e+00 : bf16
    %10 = vector.broadcast %cst_5 : bf16 to vector<24x8xbf16>
    %11 = arith.select %9, %10, %8 : vector<24x8xbf16>
    %c0_6 = arith.constant 0 : index
    %c0_7 = arith.constant 0 : index
    %c0_8 = arith.constant 0 : index
    %12 = vector.load %arg3[%c0_6, %c0_7, %c0_8] : memref<1x192x8xf32, #tpu.memory_space<vmem>>, vector<1x192x8xf32>
    %13 = vector.shape_cast %12 : vector<1x192x8xf32> to vector<192x8xf32>
    %14 = arith.truncf %13 : vector<192x8xf32> to vector<192x8xbf16>
    %cst_9 = arith.constant 0.000000e+00 : bf16
    %15 = vector.broadcast %cst_9 : bf16 to vector<2x8xbf16>
    %16 = tpu.concatenate %5, %14, %11, %15 in 0 : vector<24x8xbf16>, vector<192x8xbf16>, vector<24x8xbf16>, vector<2x8xbf16> -> vector<242x8xbf16>
    %c0_10 = arith.constant 0 : index
    %c0_11 = arith.constant 0 : index
    %c0_12 = arith.constant 0 : index
    %17 = vector.load %arg5[%c0_10, %c0_11, %c0_12] : memref<3x24x16xbf16, #tpu.memory_space<vmem>>, vector<1x24x16xbf16>
    %18 = vector.shape_cast %17 : vector<1x24x16xbf16> to vector<24x16xbf16>
    %19 = vector.extract_strided_slice %16 {offsets = [0, 0], sizes = [192, 8], strides = [1, 1]} : vector<242x8xbf16> to vector<192x8xbf16>
    %20 = vector.extract_strided_slice %18 {offsets = [0, 0], sizes = [8, 16], strides = [1, 1]} : vector<24x16xbf16> to vector<8x16xbf16>
    %cst_13 = arith.constant dense<0.000000e+00> : vector<192x16xf32>
    %21 = tpu.matmul %19, %20, %cst_13 {dimension_numbers = #tpu.dot_dimension_numbers<[1], [0], [0], [1], [0, 0, 1, 1], [], []>} : vector<192x8xbf16>, vector<8x16xbf16>, vector<192x16xf32> -> vector<192x16xf32>
    %22 = vector.extract_strided_slice %16 {offsets = [1, 0], sizes = [192, 8], strides = [1, 1]} : vector<242x8xbf16> to vector<192x8xbf16>
    %23 = vector.extract_strided_slice %18 {offsets = [8, 0], sizes = [8, 16], strides = [1, 1]} : vector<24x16xbf16> to vector<8x16xbf16>
    %cst_14 = arith.constant dense<0.000000e+00> : vector<192x16xf32>
    %24 = tpu.matmul %22, %23, %cst_14 {dimension_numbers = #tpu.dot_dimension_numbers<[1], [0], [0], [1], [0, 0, 1, 1], [], []>} : vector<192x8xbf16>, vector<8x16xbf16>, vector<192x16xf32> -> vector<192x16xf32>
    %25 = arith.addf %21, %24 : vector<192x16xf32>
    %26 = vector.extract_strided_slice %16 {offsets = [2, 0], sizes = [192, 8], strides = [1, 1]} : vector<242x8xbf16> to vector<192x8xbf16>
    %27 = vector.extract_strided_slice %18 {offsets = [16, 0], sizes = [8, 16], strides = [1, 1]} : vector<24x16xbf16> to vector<8x16xbf16>
    %cst_15 = arith.constant dense<0.000000e+00> : vector<192x16xf32>
    %28 = tpu.matmul %26, %27, %cst_15 {dimension_numbers = #tpu.dot_dimension_numbers<[1], [0], [0], [1], [0, 0, 1, 1], [], []>} : vector<192x8xbf16>, vector<8x16xbf16>, vector<192x16xf32> -> vector<192x16xf32>
    %29 = arith.addf %25, %28 : vector<192x16xf32>
    %c1 = arith.constant 1 : index
    %c0_16 = arith.constant 0 : index
    %c0_17 = arith.constant 0 : index
    %30 = vector.load %arg5[%c1, %c0_16, %c0_17] : memref<3x24x16xbf16, #tpu.memory_space<vmem>>, vector<1x24x16xbf16>
    %31 = vector.shape_cast %30 : vector<1x24x16xbf16> to vector<24x16xbf16>
    %32 = vector.extract_strided_slice %16 {offsets = [24, 0], sizes = [192, 8], strides = [1, 1]} : vector<242x8xbf16> to vector<192x8xbf16>
    %33 = vector.extract_strided_slice %31 {offsets = [0, 0], sizes = [8, 16], strides = [1, 1]} : vector<24x16xbf16> to vector<8x16xbf16>
    %cst_18 = arith.constant dense<0.000000e+00> : vector<192x16xf32>
    %34 = tpu.matmul %32, %33, %cst_18 {dimension_numbers = #tpu.dot_dimension_numbers<[1], [0], [0], [1], [0, 0, 1, 1], [], []>} : vector<192x8xbf16>, vector<8x16xbf16>, vector<192x16xf32> -> vector<192x16xf32>
    %35 = arith.addf %29, %34 : vector<192x16xf32>
    %36 = vector.extract_strided_slice %16 {offsets = [25, 0], sizes = [192, 8], strides = [1, 1]} : vector<242x8xbf16> to vector<192x8xbf16>
    %37 = vector.extract_strided_slice %31 {offsets = [8, 0], sizes = [8, 16], strides = [1, 1]} : vector<24x16xbf16> to vector<8x16xbf16>
    %cst_19 = arith.constant dense<0.000000e+00> : vector<192x16xf32>
    %38 = tpu.matmul %36, %37, %cst_19 {dimension_numbers = #tpu.dot_dimension_numbers<[1], [0], [0], [1], [0, 0, 1, 1], [], []>} : vector<192x8xbf16>, vector<8x16xbf16>, vector<192x16xf32> -> vector<192x16xf32>
    %39 = arith.addf %35, %38 : vector<192x16xf32>
    %40 = vector.extract_strided_slice %16 {offsets = [26, 0], sizes = [192, 8], strides = [1, 1]} : vector<242x8xbf16> to vector<192x8xbf16>
    %41 = vector.extract_strided_slice %31 {offsets = [16, 0], sizes = [8, 16], strides = [1, 1]} : vector<24x16xbf16> to vector<8x16xbf16>
    %cst_20 = arith.constant dense<0.000000e+00> : vector<192x16xf32>
    %42 = tpu.matmul %40, %41, %cst_20 {dimension_numbers = #tpu.dot_dimension_numbers<[1], [0], [0], [1], [0, 0, 1, 1], [], []>} : vector<192x8xbf16>, vector<8x16xbf16>, vector<192x16xf32> -> vector<192x16xf32>
    %43 = arith.addf %39, %42 : vector<192x16xf32>
    %c2 = arith.constant 2 : index
    %c0_21 = arith.constant 0 : index
    %c0_22 = arith.constant 0 : index
    %44 = vector.load %arg5[%c2, %c0_21, %c0_22] : memref<3x24x16xbf16, #tpu.memory_space<vmem>>, vector<1x24x16xbf16>
    %45 = vector.shape_cast %44 : vector<1x24x16xbf16> to vector<24x16xbf16>
    %46 = vector.extract_strided_slice %16 {offsets = [48, 0], sizes = [192, 8], strides = [1, 1]} : vector<242x8xbf16> to vector<192x8xbf16>
    %47 = vector.extract_strided_slice %45 {offsets = [0, 0], sizes = [8, 16], strides = [1, 1]} : vector<24x16xbf16> to vector<8x16xbf16>
    %cst_23 = arith.constant dense<0.000000e+00> : vector<192x16xf32>
    %48 = tpu.matmul %46, %47, %cst_23 {dimension_numbers = #tpu.dot_dimension_numbers<[1], [0], [0], [1], [0, 0, 1, 1], [], []>} : vector<192x8xbf16>, vector<8x16xbf16>, vector<192x16xf32> -> vector<192x16xf32>
    %49 = arith.addf %43, %48 : vector<192x16xf32>
    %50 = vector.extract_strided_slice %16 {offsets = [49, 0], sizes = [192, 8], strides = [1, 1]} : vector<242x8xbf16> to vector<192x8xbf16>
    %51 = vector.extract_strided_slice %45 {offsets = [8, 0], sizes = [8, 16], strides = [1, 1]} : vector<24x16xbf16> to vector<8x16xbf16>
    %cst_24 = arith.constant dense<0.000000e+00> : vector<192x16xf32>
    %52 = tpu.matmul %50, %51, %cst_24 {dimension_numbers = #tpu.dot_dimension_numbers<[1], [0], [0], [1], [0, 0, 1, 1], [], []>} : vector<192x8xbf16>, vector<8x16xbf16>, vector<192x16xf32> -> vector<192x16xf32>
    %53 = arith.addf %49, %52 : vector<192x16xf32>
    %54 = vector.extract_strided_slice %16 {offsets = [50, 0], sizes = [192, 8], strides = [1, 1]} : vector<242x8xbf16> to vector<192x8xbf16>
    %55 = vector.extract_strided_slice %45 {offsets = [16, 0], sizes = [8, 16], strides = [1, 1]} : vector<24x16xbf16> to vector<8x16xbf16>
    %cst_25 = arith.constant dense<0.000000e+00> : vector<192x16xf32>
    %56 = tpu.matmul %54, %55, %cst_25 {dimension_numbers = #tpu.dot_dimension_numbers<[1], [0], [0], [1], [0, 0, 1, 1], [], []>} : vector<192x8xbf16>, vector<8x16xbf16>, vector<192x16xf32> -> vector<192x16xf32>
    %57 = arith.addf %53, %56 : vector<192x16xf32>
    %58 = vector.shape_cast %57 : vector<192x16xf32> to vector<8x24x16xf32>
    %59 = vector.extract_strided_slice %58 {offsets = [0, 0, 0], sizes = [8, 16, 16], strides = [1, 1, 1]} : vector<8x24x16xf32> to vector<8x16x16xf32>
    %c0_26 = arith.constant 0 : index
    %c0_27 = arith.constant 0 : index
    %60 = vector.load %arg6[%c0_26, %c0_27] : memref<1x16xf32, #tpu.memory_space<vmem>>, vector<1x16xf32>
    %61 = vector.shape_cast %60 : vector<1x16xf32> to vector<1x1x16xf32>
    %62 = vector.broadcast %61 : vector<1x1x16xf32> to vector<8x16x16xf32>
    %63 = arith.addf %59, %62 : vector<8x16x16xf32>
    %cst_28 = arith.constant 0.000000e+00 : f32
    %64 = vector.broadcast %cst_28 : f32 to vector<8x16x16xf32>
    %65 = arith.maximumf %63, %64 : vector<8x16x16xf32>
    %66 = vector.shape_cast %65 : vector<8x16x16xf32> to vector<4x2x16x16xf32>
    %cst_29 = arith.constant dense<0xFF800000> : vector<4x16x16xf32>
    %67 = vector.multi_reduction <maximumf>, %66, %cst_29 [1] : vector<4x2x16x16xf32> to vector<4x16x16xf32>
    %c0_30 = arith.constant 0 : index
    %c0_31 = arith.constant 0 : index
    %c0_32 = arith.constant 0 : index
    %68 = vector.load %arg8[%c0_30, %c0_31, %c0_32] : memref<4x16x16xf32, #tpu.memory_space<vmem>>, vector<4x16x16xf32>
    tpu.vector_store %arg8[%c0_30, %c0_31, %c0_32], %67 {strides = array<i32>} : memref<4x16x16xf32, #tpu.memory_space<vmem>>, vector<4x16x16xf32>,
    %c0_33 = arith.constant 0 : index
    %c0_34 = arith.constant 0 : index
    %c0_35 = arith.constant 0 : index
    %69 = tpu.strided_load %arg8[%c0_33, %c0_34, %c0_35] {strides = array<i32: 1, 2, 1>} : memref<4x16x16xf32, #tpu.memory_space<vmem>>, vector<4x8x16xf32>
    %c0_36 = arith.constant 0 : index
    %c1_37 = arith.constant 1 : index
    %c0_38 = arith.constant 0 : index
    %70 = tpu.strided_load %arg8[%c0_36, %c1_37, %c0_38] {strides = array<i32: 1, 2, 1>} : memref<4x16x16xf32, #tpu.memory_space<vmem>>, vector<4x8x16xf32>
    %71 = arith.maximumf %69, %70 : vector<4x8x16xf32>
    %72 = arith.truncf %71 : vector<4x8x16xf32> to vector<4x8x16xbf16>
    %cst_39 = arith.constant 0.000000e+00 : bf16
    %73 = vector.broadcast %cst_39 : bf16 to vector<4x1x16xbf16>
    %cst_40 = arith.constant 0.000000e+00 : bf16
    %74 = vector.broadcast %cst_40 : bf16 to vector<4x7x16xbf16>
    %75 = tpu.concatenate %73, %72, %74 in 1 : vector<4x1x16xbf16>, vector<4x8x16xbf16>, vector<4x7x16xbf16> -> vector<4x16x16xbf16>
    %76 = vector.shape_cast %75 : vector<4x16x16xbf16> to vector<64x16xbf16>
    %c0_41 = arith.constant 0 : index
    %c0_42 = arith.constant 0 : index
    %c0_43 = arith.constant 0 : index
    %77 = vector.load %arg7[%c0_41, %c0_42, %c0_43] : memref<1x64x16xbf16, #tpu.memory_space<vmem>>, vector<1x64x16xbf16>
    %78 = vector.shape_cast %77 : vector<1x64x16xbf16> to vector<64x16xbf16>
    %79 = vector.shape_cast %76 : vector<64x16xbf16> to vector<1x64x16xbf16>
    tpu.vector_store %arg7[%c0_41, %c0_42, %c0_43], %79 {strides = array<i32>} : memref<1x64x16xbf16, #tpu.memory_space<vmem>>, vector<1x64x16xbf16>,
    return
  }
  func.func @transform_0(%arg0: i32, %arg1: i32) -> (i32, i32, i32) {
    %c8_i32 = arith.constant 8 : i32
    %0 = arith.muli %arg1, %c8_i32 : i32
    %c1_i32 = arith.constant 1 : i32
    %1 = arith.subi %0, %c1_i32 : i32
    %c0_i32 = arith.constant 0 : i32
    %2 = arith.maxsi %1, %c0_i32 : i32
    %c0_i32_0 = arith.constant 0 : i32
    %c0_i32_1 = arith.constant 0 : i32
    return %arg0, %2, %c0_i32_0 : i32, i32, i32
  }
  func.func @transform_1(%arg0: i32, %arg1: i32) -> (i32, i32, i32) {
    %c0_i32 = arith.constant 0 : i32
    %c0_i32_0 = arith.constant 0 : i32
    return %arg0, %arg1, %c0_i32 : i32, i32, i32
  }
  func.func @transform_2(%arg0: i32, %arg1: i32) -> (i32, i32, i32) {
    %c8_i32 = arith.constant 8 : i32
    %0 = arith.muli %arg1, %c8_i32 : i32
    %c8_i32_0 = arith.constant 8 : i32
    %1 = arith.addi %0, %c8_i32_0 : i32
    %c31_i32 = arith.constant 31 : i32
    %2 = arith.minsi %1, %c31_i32 : i32
    %c0_i32 = arith.constant 0 : i32
    %c0_i32_1 = arith.constant 0 : i32
    return %arg0, %2, %c0_i32 : i32, i32, i32
  }
  func.func @transform_3(%arg0: i32, %arg1: i32) -> (i32, i32, i32) {
    %c0_i32 = arith.constant 0 : i32
    %c0_i32_0 = arith.constant 0 : i32
    %c0_i32_1 = arith.constant 0 : i32
    %c0_i32_2 = arith.constant 0 : i32
    return %c0_i32, %c0_i32_0, %c0_i32_1 : i32, i32, i32
  }
  func.func @transform_4(%arg0: i32, %arg1: i32) -> (i32, i32) {
    %c0_i32 = arith.constant 0 : i32
    %c0_i32_0 = arith.constant 0 : i32
    %c0_i32_1 = arith.constant 0 : i32
    return %c0_i32, %c0_i32_0 : i32, i32
  }
  func.func @transform_5(%arg0: i32, %arg1: i32) -> (i32, i32, i32) {
    %c0_i32 = arith.constant 0 : i32
    %c0_i32_0 = arith.constant 0 : i32
    return %arg0, %arg1, %c0_i32 : i32, i32, i32
  }
}

</mosaic_0001>

<bundles_post_ra>
// kernel: tpu_custom_call.1
= control target key start
LH: loop header
LB: loop body
LE: loop exit
PB: predicated region body
PF: predicated region fallthrough
CT: control target
= control target key end

     0   :  { %s3154_s18 = smov 0   ;;  %s3156_s19 = smov 0   ;;  %s4155_s0 = inlined_call_operand.vmem [shape: f32[2,768,8], index: 0, kind: input, shape index: {}]   ;;  %s4156_s1 = inlined_call_operand.vmem [shape: f32[2,768,8], index: 1, kind: input, shape index: {}]   ;;  %s4157_s2 = inlined_call_operand.vmem [shape: f32[2,768,8], index: 2, kind: input, shape index: {}]   ;;  %s4158_s3 = inlined_call_operand.vmem [shape: bf16[3,24,16], index: 3, kind: input, shape index: {}]   ;;  %s4159_s4 = inlined_call_operand.vmem [shape: f32[1,16], index: 4, kind: input, shape index: {}]   ;;  %s4160_s5 = inlined_call_operand.vmem [shape: bf16[2,256,16], index: 5, kind: output, shape index: {}]  }
   0x1   :  { %s3158_s20 = smov 0   ;;  %s3160_s21 = smov 0  }
   0x2   :  { %s3162_s22 = smov 0  }
   0x3 LB: > { %s24_s23 = sadd.s32 1, %s3113_s20  ;;  %s27_s24 = sadd.s32 1, %s3117_s21  ;;  %s3121_s22 = sphi %s3162_s22, %s15_s22   ;;  %s3117_s21 = sphi %s3160_s21, %s4170_s21   ;;  %s3113_s20 = sphi %s3158_s20, %s4169_s20   ;;  %s3109_s19 = sphi %s3156_s19, %s4168_s19   ;;  %s3105_s18 = sphi %s3154_s18, %s4167_s18  }
   0x4   : > { %p25_p0 = scmp.ge.s32.totalorder %s24_s23, 4  ;;  %p2543_p1 = scmp.ge.s32.totalorder %s3121_s22, 1 }
   0x5   : > { %p274_p2 = scmp.lt.s32.totalorder %s3121_s22, 9 }
   0x6   : > { %s4172_s23 = smov (%p25_p0, %s24_s23), 0  ;;  %s4174_s24 = smov (!%p25_p0, %s27_s24), %s3117_s21 }
   0x7   : > { %p275_p3 = pnand %p2543_p1, %p274_p2  ;;  %p29_p4 = scmp.ge.s32.totalorder %s4174_s24, 2 }
   0x8   : > { %vm463_vm0 = vcmask (!%p275_p3), 1043456   ;;  %v500_v0 = vld [vmem:[%s4158_s3 + $0x4] sm:$0xf] (!%p275_p3)  ;;  %p341_p5 = scmp.lt.s32.totalorder (!%p275_p3), %s3109_s19, 1  ;;  %s354_s27 = smul.u32 (!%p275_p3), 24, %s3105_s18  ;;  %vm602_vm2 = vcmask (!%p275_p3), 64512  }
   0x9   : > { %s4176_s24 = smov (%p29_p4, %s4174_s24), 0  ;;  %278 = sbr.rel (%p275_p3) target bundleno = 500 (0x1f4), region = 40 }
   0xa   : > { %3032 = vmatprep.subr.msk.bf16.mxu1 (!%p275_p3), %vm463_vm0, %v500_v0  ;;  %v640_v1 = vsel (!%p275_p3), %vm463_vm0, %v500_v0, 0  ;;  %3031 = vmatprep.subr.msk.bf16.mxu0 (!%p275_p3), %vm463_vm0, %v500_v0  ;;  %v3196_v2 = vld [vmem:[%s4158_s3] sm:$0xf] (!%p275_p3)  ;;  %s3199_s30 = sshll.u32 (!%p275_p3), %s3105_s18, 3  ;;  %v3206_v3 = vld [vmem:[%s4158_s3 + $0x8] sm:$0xf] (!%p275_p3) }
   0xb   : > { %3030 = vmatpush3.bf16.msra.mxu1 (!%p275_p3), %v640_v1  ;;  %2796 = vmatpush3.bf16.msra.mxu0 (!%p275_p3), %v640_v1  ;;  %p357_p6 = scmp.lt.s32.totalorder (!%p275_p3), %s354_s27, 95  ;;  %s2545_s8 = sadd.s32 (!%p275_p3), 4294967295, %s3199_s30  ;;  %vm502_vm1 = vsmask.f32 (!%p275_p3), 7424  ;;  %v788_v40 = vsel (!%p275_p3), %vm463_vm0, %v3196_v2, 0  ;;  %v3284_v46 = vsel (!%p275_p3), %vm463_vm0, %v3206_v3, 0 }
   0xc   : > { %3033 = vmatprep.subr.msk.bf16.mxu1 (!%p275_p3), %vm463_vm0, %v3196_v2  ;;  %3034 = vmatprep.subr.msk.bf16.mxu0 (!%p275_p3), %vm463_vm0, %v3206_v3  ;;  %p338_p7 = scmp.gt.s32.totalorder (!%p275_p3), %s2545_s8, 0  ;;  %s365_s11 = sadd.s32 (!%p275_p3), 8, %s3199_s30  ;;  %vm913_vm4 = vcmask (!%p275_p3), 1046528   ;;  %vm1321_vm5 = vsmask.f32 (!%p275_p3), 3328  ;;  %vm1555_vm7 = vcmask (!%p275_p3), 1042432  }
   0xd   : > { %p366_p8 = scmp.lt.s32.totalorder (!%p275_p3), %s365_s11, 31  ;;  %p385_p10 = scmp.lt.s32.totalorder (!%p275_p3), %s3199_s30, 31  ;;  %vm2268_vm8 = vcmask (!%p275_p3), 130048   ;;  %vm2356_vm9 = vcmask (!%p275_p3), 1040384   ;;  %vm2357_vm10 = vsmask.f32 (!%p275_p3), 256 }
   0xe   : > { %p398_p11 = scmp.eq.s32.totalorder (!%p275_p3), %s3105_s18, 0  ;;  %p409_p13 = scmp.eq.s32.totalorder (!%p275_p3), %s3105_s18, 3  ;;  %vm2363_vm11 = vcmask (!%p275_p3), 1044480   ;;  %vm2364_vm12 = vsmask.f32 (!%p275_p3), 4352  ;;  %vm4075_vm13 = vmand (!%p275_p3), %vm2356_vm9, %vm2357_vm10  ;;  %vm2398_vm15 = vcmask (!%p275_p3), 125952  }
   0xf   : > { %vm4083_vm14 = vmand (!%p275_p3), %vm2363_vm11, %vm2364_vm12 }
  0x10   : > { %s4178_s19 = smov (!%p341_p5, %s3109_s19), 1  ;;  %s4180_s27 = smov (!%p357_p6, %s354_s27), 95 }
  0x11   : > { %s3214_s9 = smul.u32 96, %s4178_s19  ;;  %s4182_s8 = smov (!%p338_p7, %s2545_s8), 0 }
  0x12   : > { %s340_s13 = smul.u32 3, %s4182_s8  ;;  %s4184_s11 = smov (!%p366_p8, %s365_s11), 31 }
  0x13   : > { %s360_s10 = sadd.s32 %s3214_s9, %s4180_s27  ;;  %s4188_s30 = smov (!%p385_p10, %s3199_s30), 31 }
  0x14   : > { %s2547_s12 = sshll.u32 %s360_s10, 3  ;;  %p343_p9 = scmp.lt.s32.totalorder %s340_s13, 95 }
  0x15   : > { %s3221_s16 = scalar_lea.vmem %s4156_s1, %s2547_s12  ;;  %s2551_s25 = sshll.u32 %s4178_s19, 5 }
  0x16   : > { %v423_v4 = vld [vmem:[%s3221_s16 + $0x40] sm:$0xff]  ;;  %v424_v5 = vld [vmem:[%s3221_s16 + $0x48] sm:$0xff]  ;;  %v425_v6 = vld [vmem:[%s3221_s16 + $0x50] sm:$0xff]  ;;  %s4186_s13 = smov (!%p343_p9, %s340_s13), 95  ;;  %s3247_s27 = sadd.s32 %s2551_s25, %s4188_s30 }
  0x17   : > { %v426_v7 = vld [vmem:[%s3221_s16 + $0x58] sm:$0xff]  ;;  %v427_v8 = vld [vmem:[%s3221_s16 + $0x60] sm:$0xff]  ;;  %v428_v9 = vld [vmem:[%s3221_s16 + $0x68] sm:$0xff]  ;;  %v443_v10 = vpack.c.bf16 %v424_v5, %v423_v4  ;;  %s346_s17 = sadd.s32 %s3214_s9, %s4186_s13  ;;  %s368_s30 = smul.u32 3, %s4184_s11 }
  0x18   : > { %v444_v11 = vpack.c.bf16 %v426_v7, %v425_v6  ;;  %v445_v12 = vpack.c.bf16 %v428_v9, %v427_v8  ;;  %v429_v13 = vld [vmem:[%s3221_s16 + $0x70] sm:$0xff]  ;;  %v430_v14 = vld [vmem:[%s3221_s16 + $0x78] sm:$0xff]  ;;  %v415_v15 = vld [vmem:[%s3221_s16] sm:$0xff]  ;;  %s2546_s26 = sshll.u32 %s346_s17, 3  ;;  %s2552_s8 = sshll.u32 %s3247_s27, 2 }
  0x19   : > { %v3235_v16 = vrot.slane %v443_v10, 4  ;;  %v446_v17 = vpack.c.bf16 %v430_v14, %v429_v13  ;;  %v416_v18 = vld [vmem:[%s3221_s16 + $0x8] sm:$0xff]  ;;  %v417_v19 = vld [vmem:[%s3221_s16 + $0x10] sm:$0xff]  ;;  %v418_v20 = vld [vmem:[%s3221_s16 + $0x18] sm:$0xff]  ;;  %s348_s29 = scalar_lea.vmem %s4155_s0, %s2546_s26  ;;  %p371_p12 = scmp.lt.s32.totalorder %s368_s30, 95 }
  0x1a   : > { %v473_v21 = vrot.slane %v444_v11, 4  ;;  %v475_v22 = vrot.slane %v445_v12, 4  ;;  %v439_v23 = vpack.c.bf16 %v416_v18, %v415_v15  ;;  %v440_v24 = vpack.c.bf16 %v418_v20, %v417_v19  ;;  %v431_v25 = vld [vmem:[%s3221_s16 + $0x80] sm:$0xff]  ;;  %v432_v26 = vld [vmem:[%s3221_s16 + $0x88] sm:$0xff]  ;;  %v395_v41 = vld [vmem:[%s348_s29 + $0x10] sm:$0xff]  ;;  %s4094_s11 = scalar_lea.vmem %s4160_s5, %s2552_s8 }
  0x1b   : > { %v477_v27 = vrot.slane %v446_v17, 4  ;;  %v447_v28 = vpack.c.bf16 %v432_v26, %v431_v25  ;;  %v393_v37 = vld [vmem:[%s348_s29] sm:$0xff]  ;;  %v394_v38 = vld [vmem:[%s348_s29 + $0x8] sm:$0xff]  ;;  %v433_v47 = vld [vmem:[%s3221_s16 + $0x90] sm:$0xff]  ;;  %v397_v51 = vpack.c.bf16 %v395_v41, %v395_v41  ;;  %s399_s6 = scalar_select %p398_p11, 1, 0 }
  0x1c   : > { %v3251_v29 = vsel %vm463_vm0, %v3235_v16, %v473_v21  ;;  %v3254_v30 = vsel %vm463_vm0, %v473_v21, %v475_v22  ;;  %v464_v31 = vrot.slane %v439_v23, 4  ;;  %v3259_v32 = vrot.slane %v440_v24, 4  ;;  %v434_v48 = vld [vmem:[%s3221_s16 + $0x98] sm:$0xff]  ;;  %s4190_s30 = smov (!%p371_p12, %s368_s30), 95  ;;  %v419_v4 = vld [vmem:[%s3221_s16 + $0x20] sm:$0xff]  ;;  %v420_v5 = vld [vmem:[%s3221_s16 + $0x28] sm:$0xff] }
  0x1d   : > { %v550_v33 = vshll.u32 %v3251_v29, 16  ;;  %v554_v34 = vshrl.u32 %v3251_v29, 16  ;;  %v558_v35 = vshll.u32 %v3254_v30, 16  ;;  %v562_v36 = vshrl.u32 %v3254_v30, 16  ;;  %v3324_v6 = vld [vmem:[%s4158_s3 + $0xc] sm:$0xf]  ;;  %s374_s10 = sadd.s32 %s3214_s9, %s4190_s30 }
  0x1e   : > { %v3266_v39 = vsel %vm463_vm0, %v475_v22, %v477_v27  ;;  %v479_v42 = vrot.slane %v447_v28, 4  ;;  %v3280_v45 = vsel %vm463_vm0, %v464_v31, %v3259_v32  ;;  %v396_v50 = vpack.c.bf16 %v394_v38, %v393_v37  ;;  %v421_v11 = vld [vmem:[%s3221_s16 + $0x30] sm:$0xff]  ;;  %v422_v12 = vld [vmem:[%s3221_s16 + $0x38] sm:$0xff]  ;;  %v435_v18 = vld [vmem:[%s3221_s16 + $0xa0] sm:$0xff]  ;;  %s2549_s15 = sshll.u32 %s374_s10, 3 }
  0x1f   : > { %v3274_v43 = vrot.slane %v550_v33, 1  ;;  %v560_v44 = vrot.slane %v558_v35, 1  ;;  %v566_v49 = vshll.u32 %v3266_v39, 16  ;;  %v570_v55 = vshrl.u32 %v3266_v39, 16  ;;  %v436_v19 = vld [vmem:[%s3221_s16 + $0xa8] sm:$0xff]  ;;  %v437_v28 = vld [vmem:[%s3221_s16 + $0xb0] sm:$0xff]  ;;  %s3509_s17 = scalar_lea.vmem %s4157_s2, %s2549_s15 }
  0x20   : > { %v3290_v52 = vsel %vm463_vm0, %v477_v27, %v479_v42  ;;  %v400_v58 = vstv %s399_s6  ;;  %v518_v59 = vshll.u32 %v3280_v45, 16  ;;  %v448_v60 = vpack.c.bf16 %v434_v48, %v433_v47  ;;  %s410_s28 = scalar_select %p409_p13, 1, 0 }
  0x21   : > { %v556_v53 = vor.u32 %v554_v34, %v3274_v43  ;;  %v564_v54 = vor.u32 %v562_v36, %v560_v44  ;;  %v574_v56 = vshll.u32 %v3290_v52, 16  ;;  %v568_v57 = vrot.slane %v566_v49, 1 }
  0x22   : > { %vm401_vm3 = vcmp.eq.s32.totalorder %v400_v58, 1  ;;  %v578_v63 = vshrl.u32 %v3290_v52, 16  ;;  %v481_v10 = vrot.slane %v448_v60, 4  ;;  %v520_v15 = vrot.slane %v518_v59, 1 }
  0x23   : > { %v3303_v61 = vsel %vm502_vm1, %v556_v53, %v560_v44  ;;  %v576_v62 = vrot.slane %v574_v56, 1  ;;  %v3313_v0 = vsel %vm502_vm1, %v564_v54, %v568_v57  ;;  %v3315_v1 = vsel %vm401_vm3, 0, %v396_v50 }
  0x24   : > { %2809 = vmatprep.mubr.msk.bf16.mxu1 %vm602_vm2, %v3303_v61  ;;  %v403_v2 = vsel %vm401_vm3, 0, %v397_v51  ;;  %v572_v3 = vor.u32 %v570_v55, %v568_v57  ;;  %v504_v8 = vshrl.u32 %v3315_v1, 16  ;;  %v506_v9 = vshll.u32 %v3315_v1, 16 }
  0x25   : > { %2810 = vmatmul.mubr.msk.bf16.vlgmr.msra.gmra.mrb[0].mxu1 %vm602_vm2, %v3313_v0  ;;  %v3329_v7 = vsel %vm463_vm0, %v403_v2, %v464_v31  ;;  %v3349_v21 = vsel %vm463_vm0, %v479_v42, %v481_v10  ;;  %v441_v22 = vpack.c.bf16 %v420_v5, %v419_v4  ;;  %v522_v23 = vshrl.u32 %v3280_v45, 16  ;;  %v438_v31 = vld [vmem:[%s3221_s16 + $0xb8] sm:$0xff]  ;;  %v3385_v2 = vld [vmem:[%s4158_s3 + $0x10] sm:$0xf] }
  0x26   : > { %2822 = vmatpush3.bf16.msra.mxu1 %v788_v40  ;;  %v510_v13 = vshll.u32 %v3329_v7, 16  ;;  %v514_v14 = vshrl.u32 %v3329_v7, 16  ;;  %v3342_v17 = vsel %vm502_vm1, %v572_v3, %v576_v62  ;;  %v508_v20 = vrot.slane %v506_v9, 1 }
  0x27   : > { %2813 = vmatprep.mubr.msk.bf16.mxu1 %vm602_vm2, %v3342_v17  ;;  %3035 = vmatprep.subr.msk.bf16.mxu1 %vm463_vm0, %v3324_v6  ;;  %v580_v25 = vor.u32 %v578_v63, %v576_v62  ;;  %v582_v26 = vshll.u32 %v3349_v21, 16  ;;  %v442_v27 = vpack.c.bf16 %v422_v12, %v421_v11  ;;  %v467_v38 = vrot.slane %v441_v22, 4 }
  0x28   : > { %v512_v24 = vrot.slane %v510_v13, 1  ;;  %v509_v37 = vor.u32 %v508_v20, %v504_v8  ;;  %v524_v40 = vor.u32 %v522_v23, %v520_v15  ;;  %v449_v41 = vpack.c.bf16 %v436_v19, %v435_v18 }
  0x29   : > { %v584_v44 = vrot.slane %v582_v26, 1  ;;  %v469_v47 = vrot.slane %v442_v27, 4  ;;  %v586_v48 = vshrl.u32 %v3349_v21, 16  ;;  %v3371_v51 = vsel %vm463_vm0, %v3259_v32, %v467_v38 }
  0x2a   : > { %v516_v42 = vor.u32 %v514_v14, %v512_v24  ;;  %v513_v50 = vsel %vm502_vm1, %v509_v37, %v512_v24  ;;  %v483_v53 = vrot.slane %v449_v41, 4  ;;  %v450_v54 = vpack.c.bf16 %v438_v31, %v437_v28 }
  0x2b   : > { %2797 = vmatprep.mubr.msk.bf16.mxu0 %vm602_vm2, %v513_v50  ;;  %v3376_v58 = vsel %vm502_vm1, %v580_v25, %v584_v44  ;;  %v526_v60 = vshll.u32 %v3371_v51, 16  ;;  %v3380_v62 = vsel %vm463_vm0, %v467_v38, %v469_v47  ;;  %v530_v32 = vshrl.u32 %v3371_v51, 16 }
  0x2c   : > { %v521_v57 = vsel %vm502_vm1, %v516_v42, %v520_v15  ;;  %v534_v3 = vshll.u32 %v3380_v62, 16  ;;  %v3393_v4 = vsel %vm463_vm0, %v481_v10, %v483_v53  ;;  %v588_v8 = vor.u32 %v586_v48, %v584_v44 }
  0x2d   : > { %2798 = vmatmul.mubr.msk.bf16.vlgmr.msra.gmra.mrb[0].mxu0 %vm602_vm2, %v521_v57  ;;  %2814 = vmatmul.mubr.msk.bf16.gmra.mrb[4].mxu1 %vm602_vm2, %v3376_v58  ;;  %v528_v5 = vrot.slane %v526_v60, 1  ;;  %v590_v9 = vshll.u32 %v3393_v4, 16  ;;  %v3399_v11 = vrot.slane %v450_v54, 4  ;;  %v594_v15 = vshrl.u32 %v3393_v4, 16 }
  0x2e   : > { %2848 = vmatpush3.bf16.msra.mxu0 %v3284_v46  ;;  %v536_v12 = vrot.slane %v534_v3, 1  ;;  %v3404_v18 = vsel %vm463_vm0, %v469_v47, %v3235_v16  ;;  %v538_v16 = vshrl.u32 %v3380_v62, 16  ;;  %v914_v47 = vrot.slane %v3315_v1, 1 }
  0x2f   : > { %3036 = vmatprep.subr.msk.bf16.mxu0 %vm463_vm0, %v3385_v2  ;;  %v529_v46 = vsel %vm502_vm1, %v524_v40, %v528_v5  ;;  %v532_v10 = vor.u32 %v530_v32, %v528_v5  ;;  %v592_v19 = vrot.slane %v590_v9, 1  ;;  %v3413_v20 = vsel %vm463_vm0, %v483_v53, %v3399_v11 }
  0x30   : > { %2801 = vmatprep.mubr.msk.bf16.mxu0 %vm602_vm2, %v529_v46  ;;  %v598_v22 = vshll.u32 %v3413_v20, 16  ;;  %v542_v24 = vshll.u32 %v3404_v18, 16  ;;  %v546_v31 = vshrl.u32 %v3404_v18, 16  ;;  %v540_v38 = vor.u32 %v538_v16, %v536_v12 }
  0x31   : > { %v3420_v25 = vsel %vm502_vm1, %v532_v10, %v536_v12  ;;  %v3423_v27 = vsel %vm502_vm1, %v588_v8, %v592_v19  ;;  %v596_v28 = vor.u32 %v594_v15, %v592_v19  ;;  %v915_v50 = vrot.slane %v3329_v7, 1 }
  0x32   : > { %2817 = vmatprep.mubr.msk.bf16.mxu1 %vm602_vm2, %v3423_v27  ;;  %v3432_v37 = vrot.slane %v598_v22, 1  ;;  %v544_v40 = vrot.slane %v542_v24, 1  ;;  %v1330_v53 = vrot.slane %v526_v60, 5  ;;  %v1329_v54 = vrot.slane %v530_v32, 4 }
  0x33   : > { %v1323_v57 = vrot.slane %v510_v13, 5  ;;  %v916_v8 = vsel %vm913_vm4, %v914_v47, %v915_v50  ;;  %v1322_v12 = vrot.slane %v514_v14, 4  ;;  %v1182_v60 = vsel %vm463_vm0, %v3324_v6, 0 }
  0x34   : > { %v3438_v41 = vsel %vm502_vm1, %v596_v28, %v3432_v37  ;;  %v3441_v42 = vsel %vm502_vm1, %v540_v38, %v544_v40  ;;  %v548_v44 = vor.u32 %v546_v31, %v544_v40  ;;  %v1326_v32 = vrot.slane %v518_v59, 5 }
  0x35   : > { %2802 = vmatmul.mubr.msk.bf16.gmra.mrb[4].mxu0 %vm602_vm2, %v3420_v25  ;;  %2818 = vmatmul.mubr.msk.bf16.gmra.mrb[8].mxu1 %vm602_vm2, %v3438_v41  ;;  %v1331_v46 = vor.u32 %v1330_v53, %v1329_v54  ;;  %v1341_v13 = vrot.slane %v554_v34, 4  ;;  %v1324_v14 = vor.u32 %v1323_v57, %v1322_v12  ;;  %v1333_v6 = vrot.slane %v538_v16, 4  ;;  %v3523_v12 = vld [vmem:[%s4158_s3 + $0x18] sm:$0xf] }
  0x36   : > { %2805 = vmatprep.mubr.msk.bf16.mxu0 %vm602_vm2, %v3441_v42  ;;  %2823 = vmatprep.mubr.msk.bf16.mxu1 %vm602_vm2, %v3315_v1  ;;  %v3455_v5 = vsel %vm502_vm1, %v548_v44, %v3274_v43  ;;  %v1325_v1 = vrot.slane %v522_v23, 4  ;;  %v3473_v43 = vld [vmem:[%s4158_s3 + $0x14] sm:$0xf]  ;;  %v917_v34 = vrot.slane %v3280_v45, 1  ;;  %v1334_v23 = vrot.slane %v534_v3, 5 }
  0x37   : > { %v1337_v10 = vrot.slane %v546_v31, 4  ;;  %v1346_v19 = vrot.slane %v558_v35, 5  ;;  %v919_v16 = vrot.slane %v3371_v51, 1  ;;  %v1338_v28 = vrot.slane %v542_v24, 5 }
  0x38   : > { %v1327_v59 = vor.u32 %v1326_v32, %v1325_v1  ;;  %v1335_v31 = vor.u32 %v1334_v23, %v1333_v6  ;;  %v1342_v35 = vrot.slane %v550_v33, 5  ;;  %v1345_v44 = vrot.slane %v562_v36, 4 }
  0x39   : > { %v1339_v40 = vor.u32 %v1338_v28, %v1337_v10  ;;  %v918_v24 = vsel %vm913_vm4, %v915_v50, %v917_v34  ;;  %v1416_v47 = vsel %vm463_vm0, %v3385_v2, 0  ;;  %v1349_v50 = vrot.slane %v570_v55, 4 }
  0x3a   : > { %v3490_v38 = vsel %vm1321_vm5, %v1324_v14, %v1327_v59  ;;  %v3493_v3 = vsel %vm1321_vm5, %v1327_v59, %v1331_v46  ;;  %v3504_v53 = vsel %vm1321_vm5, %v1331_v46, %v1335_v31  ;;  %v1343_v54 = vor.u32 %v1342_v35, %v1341_v13  ;;  %v404_v46 = vld [vmem:[%s3509_s17] sm:$0xff]  ;;  %v405_v13 = vld [vmem:[%s3509_s17 + $0x8] sm:$0xff] }
  0x3b   : > { %v3512_v33 = vsel %vm1321_vm5, %v1335_v31, %v1339_v40  ;;  %v1347_v36 = vor.u32 %v1346_v19, %v1345_v44  ;;  %v1350_v2 = vrot.slane %v566_v49, 5  ;;  %v920_v57 = vsel %vm913_vm4, %v917_v34, %v919_v16 }
  0x3c   : > { %v3526_v1 = vsel %vm1321_vm5, %v1339_v40, %v1343_v54  ;;  %v1354_v32 = vrot.slane %v574_v56, 5  ;;  %v923_v14 = vrot.slane %v3404_v18, 1  ;;  %v1358_v6 = vrot.slane %v582_v26, 5 }
  0x3d   : > { %2806 = vmatmul.mubr.msk.bf16.gmra.mrb[8].mxu0 %vm602_vm2, %v3455_v5  ;;  %2824 = vmatmul.mubr.msk.bf16.vlgmr.msra.gmra.mrb[12].mxu1 %vm602_vm2, %v3329_v7  ;;  %v3532_v55 = vsel %vm1321_vm5, %v1343_v54, %v1347_v36  ;;  %v1351_v49 = vor.u32 %v1350_v2, %v1349_v50  ;;  %v1361_v34 = vrot.slane %v594_v15, 4  ;;  %v1362_v23 = vrot.slane %v590_v9, 5 }
  0x3e   : > { %2849 = vmatprep.mubr.msk.bf16.mxu0 %vm602_vm2, %v916_v8  ;;  %2874 = vmatpush3.bf16.msra.mxu1 %v1182_v60  ;;  %v921_v8 = vrot.slane %v3380_v62, 1  ;;  %v1353_v60 = vrot.slane %v578_v63, 4  ;;  %v1357_v63 = vrot.slane %v586_v48, 4  ;;  %v407_v15 = vpack.c.bf16 %v405_v13, %v404_v46 }
  0x3f   : > { %2827 = vmatprep.mubr.msk.bf16.mxu1 %vm602_vm2, %v3280_v45  ;;  %3037 = vmatprep.subr.msk.bf16.mxu1 %vm463_vm0, %v3473_v43  ;;  %v3553_v56 = vsel %vm1321_vm5, %v1347_v36, %v1351_v49  ;;  %v1363_v19 = vor.u32 %v1362_v23, %v1361_v34  ;;  %v411_v28 = vstv %s410_s28  ;;  %v1365_v31 = vshrl.u32 %v3413_v20, 16 }
  0x40   : > { %v1355_v59 = vor.u32 %v1354_v32, %v1353_v60  ;;  %v3558_v48 = vsel %vm913_vm4, %v919_v16, %v921_v8  ;;  %v1359_v26 = vor.u32 %v1358_v6, %v1357_v63  ;;  %v3567_v35 = vsel %vm913_vm4, %v921_v8, %v923_v14  ;;  %v3682_v16 = vld [vmem:[%s4158_s3 + $0x1c] sm:$0xf] }
  0x41   : > { %vm3572_vm6 = vcmp.eq.s32.totalorder %v411_v28, 1  ;;  %v1368_v40 = vrot.slane %v598_v22, 5  ;;  %v1556_v36 = vrot.slane %v3329_v7, 5  ;;  %v1557_v50 = vrot.slane %v3280_v45, 5 }
  0x42   : > { %v3563_v10 = vsel %vm1321_vm5, %v1351_v49, %v1355_v59  ;;  %v3570_v9 = vsel %vm1321_vm5, %v1355_v59, %v1359_v26  ;;  %v3579_v44 = vsel %vm1321_vm5, %v1359_v26, %v1363_v19  ;;  %v925_v22 = vrot.slane %v3251_v29, 1  ;;  %v406_v26 = vld [vmem:[%s3509_s17 + $0x10] sm:$0xff] }
  0x43   : > { %v3604_v8 = vsel %vm1555_vm7, %v1556_v36, %v1557_v50  ;;  %v927_v60 = vrot.slane %v3254_v30, 1  ;;  %v929_v46 = vrot.slane %v3266_v39, 1  ;;  %v931_v13 = vrot.slane %v3290_v52, 1 }
  0x44   : > { %v3614_v32 = vsel %vm913_vm4, %v923_v14, %v925_v22  ;;  %v933_v6 = vrot.slane %v3349_v21, 1  ;;  %v935_v34 = vrot.slane %v3393_v4, 1  ;;  %v1120_v59 = vrot.slane %v3329_v7, 4 }
  0x45   : > { %2850 = vmatmul.mubr.msk.bf16.vlgmr.msra.gmra.mrb[12].mxu0 %vm602_vm2, %v918_v24  ;;  %2828 = vmatmul.mubr.msk.bf16.gmra.mrb[16].mxu1 %vm602_vm2, %v3371_v51  ;;  %v3583_v24 = vsel %vm3572_vm6, 0, %v407_v15  ;;  %v3630_v14 = vsel %vm913_vm4, %v927_v60, %v929_v46  ;;  %v3633_v63 = vsel %vm913_vm4, %v929_v46, %v931_v13  ;;  %v1121_v23 = vrot.slane %v3280_v45, 4 }
  0x46   : > { %2900 = vmatpush3.bf16.msra.mxu0 %v1416_v47  ;;  %2853 = vmatprep.mubr.msk.bf16.mxu0 %vm602_vm2, %v920_v57  ;;  %v1367_v47 = vrot.slane %v1365_v31, 4  ;;  %v489_v54 = vrot.slane %v3583_v24, 4  ;;  %v3649_v15 = vsel %vm913_vm4, %v931_v13, %v933_v6  ;;  %v937_v7 = vrot.slane %v3413_v20, 1 }
  0x47   : > { %2831 = vmatprep.mubr.msk.bf16.mxu1 %vm602_vm2, %v3380_v62  ;;  %3038 = vmatprep.subr.msk.bf16.mxu0 %vm463_vm0, %v3523_v12  ;;  %v1122_v28 = vsel %vm463_vm0, %v1120_v59, %v1121_v23  ;;  %v1123_v24 = vrot.slane %v3371_v51, 4  ;;  %v1565_v45 = vrot.slane %v3251_v29, 5 }
  0x48   : > { %v3590_v2 = vor.u32 %v1368_v40, %v1367_v47  ;;  %v3599_v57 = vsel %vm463_vm0, %v3399_v11, %v489_v54  ;;  %v3617_v11 = vsel %vm913_vm4, %v925_v22, %v927_v60  ;;  %v408_v40 = vpack.c.bf16 %v406_v26, %v406_v26 }
  0x49   : > { %v1125_v47 = vrot.slane %v3380_v62, 4  ;;  %v3670_v22 = vsel %vm913_vm4, %v935_v34, %v937_v7  ;;  %v1124_v60 = vsel %vm463_vm0, %v1121_v23, %v1123_v24  ;;  %v1374_v46 = vshll.u32 %v3599_v57, 16 }
  0x4a   : > { %v3611_v49 = vsel %vm1321_vm5, %v1363_v19, %v3590_v2  ;;  %v3652_v19 = vsel %vm913_vm4, %v933_v6, %v935_v34  ;;  %v414_v36 = vsel %vm3572_vm6, 0, %v408_v40  ;;  %v1618_v6 = vsel %vm463_vm0, %v3473_v43, 0 }
  0x4b   : > { %v490_v13 = vrot.slane %v414_v36, 4  ;;  %v1126_v59 = vsel %vm463_vm0, %v1123_v24, %v1125_v47  ;;  %v1908_v34 = vor.u32 %v1365_v31, %v3432_v37  ;;  %v1909_v26 = vrot.slane %v1374_v46, 1 }
  0x4c   : > { %v1127_v43 = vrot.slane %v3404_v18, 4  ;;  %v1129_v40 = vrot.slane %v3251_v29, 4  ;;  %v1371_v24 = vshrl.u32 %v3599_v57, 16 }
  0x4d   : > { %2854 = vmatmul.mubr.msk.bf16.gmra.mrb[16].mxu0 %vm602_vm2, %v3558_v48  ;;  %2832 = vmatmul.mubr.msk.bf16.gmra.mrb[20].mxu1 %vm602_vm2, %v3404_v18  ;;  %v3691_v23 = vsel %vm463_vm0, %v489_v54, %v490_v13 }
  0x4e   : > { %2857 = vmatprep.mubr.msk.bf16.mxu0 %vm602_vm2, %v3567_v35  ;;  %2835 = vmatprep.mubr.msk.bf16.mxu1 %vm602_vm2, %v3251_v29  ;;  %v1912_v37 = vshll.u32 %v3691_v23, 16  ;;  %v1128_v31 = vsel %vm463_vm0, %v1125_v47, %v1127_v43  ;;  %v1130_v54 = vsel %vm463_vm0, %v1127_v43, %v1129_v40  ;;  %v1911_v13 = vor.u32 %v1909_v26, %v1371_v24 }
  0x50   : > { %v3705_v36 = vrot.slane %v1912_v37, 1 }
  0x52   : > { %v3719_v47 = vsel %vm502_vm1, %v1911_v13, %v3705_v36  ;;  %v1569_v13 = vrot.slane %v3266_v39, 5 }
  0x55   : > { %2858 = vmatmul.mubr.msk.bf16.gmra.mrb[20].mxu0 %vm602_vm2, %v3614_v32  ;;  %2836 = vmatmul.mubr.msk.bf16.gmra.mrb[24].mxu1 %vm602_vm2, %v3254_v30 }
  0x56   : > { %2861 = vmatprep.mubr.msk.bf16.mxu0 %vm602_vm2, %v3617_v11  ;;  %2839 = vmatprep.mubr.msk.bf16.mxu1 %vm602_vm2, %v3266_v39 }
  0x5d   : > { %2862 = vmatmul.mubr.msk.bf16.gmra.mrb[24].mxu0 %vm602_vm2, %v3630_v14  ;;  %2840 = vmatmul.mubr.msk.bf16.gmra.mrb[28].mxu1 %vm602_vm2, %v3290_v52 }
  0x5e   : > { %2865 = vmatprep.mubr.msk.bf16.mxu0 %vm602_vm2, %v3633_v63  ;;  %2843 = vmatprep.mubr.msk.bf16.mxu1 %vm602_vm2, %v3349_v21 }
  0x65   : > { %2866 = vmatmul.mubr.msk.bf16.gmra.mrb[28].mxu0 %vm602_vm2, %v3649_v15  ;;  %2844 = vmatmul.mubr.msk.bf16.gmra.mrb[32].mxu1 %vm602_vm2, %v3393_v4 }
  0x66   : > { %2869 = vmatprep.mubr.msk.bf16.mxu0 %vm602_vm2, %v3652_v19  ;;  %2875 = vmatprep.mubr.msk.bf16.mxu1 %vm602_vm2, %v1122_v28  ;;  %v3694_v28 = vsel %vm502_vm1, %v1908_v34, %v1909_v26  ;;  %v1137_v34 = vrot.slane %v3349_v21, 4 }
  0x6d   : > { %2870 = vmatmul.mubr.msk.bf16.gmra.mrb[32].mxu0 %vm602_vm2, %v3670_v22  ;;  %2876 = vmatmul.mubr.msk.bf16.vlgmr.msra.gmra.mrb[36].mxu1 %vm602_vm2, %v1124_v60  ;;  %v2630_v60 = vld [vmem:[%s4158_s3 + $0x20] sm:$0xf] }
  0x6e   : > { %2901 = vmatprep.mubr.msk.bf16.mxu0 %vm602_vm2, %v3490_v38  ;;  %2926 = vmatpush3.bf16.msra.mxu1 %v1618_v6  ;;  %v1769_v38 = vsel %vm463_vm0, %v3523_v12, 0  ;;  %v1131_v12 = vrot.slane %v3254_v30, 4 }
  0x6f   : > { %2879 = vmatprep.mubr.msk.bf16.mxu1 %vm602_vm2, %v1126_v59  ;;  %3039 = vmatprep.subr.msk.bf16.mxu1 %vm463_vm0, %v3682_v16 }
  0x70   : > { %v1132_v6 = vsel %vm463_vm0, %v1129_v40, %v1131_v12 }
  0x75   : > { %2902 = vmatmul.mubr.msk.bf16.vlgmr.msra.gmra.mrb[36].mxu0 %vm602_vm2, %v3493_v3  ;;  %2880 = vmatmul.mubr.msk.bf16.gmra.mrb[40].mxu1 %vm602_vm2, %v1128_v31  ;;  %v1133_v3 = vrot.slane %v3266_v39, 4 }
  0x76   : > { %2952 = vmatpush3.bf16.msra.mxu0 %v1769_v38  ;;  %2905 = vmatprep.mubr.msk.bf16.mxu0 %vm602_vm2, %v3504_v53  ;;  %v1135_v53 = vrot.slane %v3290_v52, 4  ;;  %v1376_v38 = vrot.slane %v1374_v46, 5 }
  0x77   : > { %2883 = vmatprep.mubr.msk.bf16.mxu1 %vm602_vm2, %v1130_v54  ;;  %3040 = vmatprep.subr.msk.bf16.mxu0 %vm463_vm0, %v2630_v60  ;;  %v1134_v59 = vsel %vm463_vm0, %v1131_v12, %v1133_v3  ;;  %v1561_v54 = vrot.slane %v3380_v62, 5 }
  0x78   : > { %v1136_v26 = vsel %vm463_vm0, %v1133_v3, %v1135_v53  ;;  %v1138_v43 = vsel %vm463_vm0, %v1135_v53, %v1137_v34 }
  0x7d   : > { %2906 = vmatmul.mubr.msk.bf16.gmra.mrb[40].mxu0 %vm602_vm2, %v3512_v33  ;;  %2884 = vmatmul.mubr.msk.bf16.gmra.mrb[44].mxu1 %vm602_vm2, %v1132_v6  ;;  %v1139_v33 = vrot.slane %v3393_v4, 4 }
  0x7e   : > { %2909 = vmatprep.mubr.msk.bf16.mxu0 %vm602_vm2, %v3526_v1  ;;  %2887 = vmatprep.mubr.msk.bf16.mxu1 %vm602_vm2, %v1134_v59  ;;  %v1141_v1 = vrot.slane %v3413_v20, 4 }
  0x7f   : > { %v1140_v40 = vsel %vm463_vm0, %v1137_v34, %v1139_v33 }
  0x80   : > { %v1142_v37 = vsel %vm463_vm0, %v1139_v33, %v1141_v1 }
  0x85   : > { %2910 = vmatmul.mubr.msk.bf16.gmra.mrb[44].mxu0 %vm602_vm2, %v3532_v55  ;;  %2888 = vmatmul.mubr.msk.bf16.gmra.mrb[48].mxu1 %vm602_vm2, %v1136_v26  ;;  %v1143_v55 = vrot.slane %v3599_v57, 4 }
  0x86   : > { %2913 = vmatprep.mubr.msk.bf16.mxu0 %vm602_vm2, %v3553_v56  ;;  %2891 = vmatprep.mubr.msk.bf16.mxu1 %vm602_vm2, %v1138_v43  ;;  %v1373_v56 = vrot.slane %v1371_v24, 4  ;;  %v1934_v24 = vsel %vm463_vm0, %v3682_v16, 0 }
  0x87   : > { %v1144_v31 = vsel %vm463_vm0, %v1141_v1, %v1143_v55 }
  0x8d   : > { %2914 = vmatmul.mubr.msk.bf16.gmra.mrb[48].mxu0 %vm602_vm2, %v3563_v10  ;;  %2892 = vmatmul.mubr.msk.bf16.gmra.mrb[52].mxu1 %vm602_vm2, %v1140_v40  ;;  %v1377_v10 = vor.u32 %v1376_v38, %v1373_v56 }
  0x8e   : > { %2917 = vmatprep.mubr.msk.bf16.mxu0 %vm602_vm2, %v3570_v9  ;;  %2895 = vmatprep.mubr.msk.bf16.mxu1 %vm602_vm2, %v1142_v37  ;;  %v1559_v9 = vrot.slane %v3371_v51, 5 }
  0x8f   : > { %v1378_v46 = vsel %vm1321_vm5, %v3590_v2, %v1377_v10  ;;  %v1563_v2 = vrot.slane %v3404_v18, 5 }
  0x91   : > { %v1566_v16 = vsel %vm1555_vm7, %v1563_v2, %v1565_v45 }
  0x95   : > { %2918 = vmatmul.mubr.msk.bf16.gmra.mrb[52].mxu0 %vm602_vm2, %v3579_v44  ;;  %2896 = vmatmul.mubr.msk.bf16.gmra.mrb[56].mxu1 %vm602_vm2, %v1144_v31  ;;  %v1560_v44 = vsel %vm1555_vm7, %v1557_v50, %v1559_v9  ;;  %v2090_v50 = vsel %vm463_vm0, %v2630_v60, 0 }
  0x96   : > { %2921 = vmatprep.mubr.msk.bf16.mxu0 %vm602_vm2, %v3611_v49  ;;  %2927 = vmatprep.mubr.msk.bf16.mxu1 %vm602_vm2, %v3604_v8  ;;  %v1562_v49 = vsel %vm1555_vm7, %v1559_v9, %v1561_v54  ;;  %v1564_v8 = vsel %vm1555_vm7, %v1561_v54, %v1563_v2 }
  0x9d   : > { %2922 = vmatmul.mubr.msk.bf16.gmra.mrb[56].mxu0 %vm602_vm2, %v1378_v46  ;;  %2928 = vmatmul.mubr.msk.bf16.vlgmr.msra.gmra.mrb[60].mxu1 %vm602_vm2, %v1560_v44 }
  0x9e   : > { %2953 = vmatprep.mubr.msk.bf16.mxu0 %vm602_vm2, %v3371_v51  ;;  %2978 = vmatpush3.bf16.msra.mxu1 %v1934_v24  ;;  %v1567_v51 = vrot.slane %v3254_v30, 5 }
  0x9f   : > { %2931 = vmatprep.mubr.msk.bf16.mxu1 %vm602_vm2, %v1562_v49 }
  0xa0   : > { %v1568_v60 = vsel %vm1555_vm7, %v1565_v45, %v1567_v51  ;;  %v1570_v12 = vsel %vm1555_vm7, %v1567_v51, %v1569_v13 }
  0xa5   : > { %2954 = vmatmul.mubr.msk.bf16.vlgmr.msra.gmra.mrb[60].mxu0 %vm602_vm2, %v3380_v62  ;;  %2932 = vmatmul.mubr.msk.bf16.gmra.mrb[64].mxu1 %vm602_vm2, %v1564_v8  ;;  %v1571_v62 = vrot.slane %v3290_v52, 5 }
  0xa6   : > { %3004 = vmatpush3.bf16.msra.mxu0 %v2090_v50  ;;  %2957 = vmatprep.mubr.msk.bf16.mxu0 %vm602_vm2, %v3404_v18  ;;  %v1573_v18 = vrot.slane %v3349_v21, 5 }
  0xa7   : > { %2935 = vmatprep.mubr.msk.bf16.mxu1 %vm602_vm2, %v1566_v16  ;;  %v1572_v3 = vsel %vm1555_vm7, %v1569_v13, %v1571_v62 }
  0xa8   : > { %v1574_v6 = vsel %vm1555_vm7, %v1571_v62, %v1573_v18 }
  0xad   : > { %2958 = vmatmul.mubr.msk.bf16.gmra.mrb[64].mxu0 %vm602_vm2, %v3251_v29  ;;  %2936 = vmatmul.mubr.msk.bf16.gmra.mrb[68].mxu1 %vm602_vm2, %v1568_v60  ;;  %v1575_v29 = vrot.slane %v3393_v4, 5 }
  0xae   : > { %2961 = vmatprep.mubr.msk.bf16.mxu0 %vm602_vm2, %v3254_v30  ;;  %2939 = vmatprep.mubr.msk.bf16.mxu1 %vm602_vm2, %v1570_v12  ;;  %v1577_v30 = vrot.slane %v3413_v20, 5 }
  0xaf   : > { %v1576_v59 = vsel %vm1555_vm7, %v1573_v18, %v1575_v29 }
  0xb0   : > { %v1578_v53 = vsel %vm1555_vm7, %v1575_v29, %v1577_v30 }
  0xb5   : > { %2962 = vmatmul.mubr.msk.bf16.gmra.mrb[68].mxu0 %vm602_vm2, %v3266_v39  ;;  %2940 = vmatmul.mubr.msk.bf16.gmra.mrb[72].mxu1 %vm602_vm2, %v1572_v3  ;;  %v1579_v39 = vrot.slane %v3599_v57, 5 }
  0xb6   : > { %2965 = vmatprep.mubr.msk.bf16.mxu0 %vm602_vm2, %v3290_v52  ;;  %2943 = vmatprep.mubr.msk.bf16.mxu1 %vm602_vm2, %v1574_v6 }
  0xb7   : > { %v1580_v52 = vsel %vm1555_vm7, %v1577_v30, %v1579_v39 }
  0xbd   : > { %2966 = vmatmul.mubr.msk.bf16.gmra.mrb[72].mxu0 %vm602_vm2, %v3349_v21  ;;  %2944 = vmatmul.mubr.msk.bf16.gmra.mrb[76].mxu1 %vm602_vm2, %v1576_v59 }
  0xbe   : > { %2969 = vmatprep.mubr.msk.bf16.mxu0 %vm602_vm2, %v3393_v4  ;;  %2947 = vmatprep.mubr.msk.bf16.mxu1 %vm602_vm2, %v1578_v53 }
  0xc5   : > { %2970 = vmatmul.mubr.msk.bf16.gmra.mrb[76].mxu0 %vm602_vm2, %v3413_v20  ;;  %2948 = vmatmul.mubr.msk.bf16.gmra.mrb[80].mxu1 %vm602_vm2, %v1580_v52 }
  0xc6   : > { %2973 = vmatprep.mubr.msk.bf16.mxu0 %vm602_vm2, %v3599_v57  ;;  %2979 = vmatprep.mubr.msk.bf16.mxu1 %vm602_vm2, %v3420_v25 }
  0xcd   : > { %2974 = vmatmul.mubr.msk.bf16.gmra.mrb[80].mxu0 %vm602_vm2, %v3691_v23  ;;  %2980 = vmatmul.mubr.msk.bf16.vlgmr.msra.gmra.mrb[84].mxu1 %vm602_vm2, %v3441_v42 }
  0xce   : > { %3005 = vmatprep.mubr.msk.bf16.mxu0 %vm602_vm2, %v3558_v48  ;;  %2983 = vmatprep.mubr.msk.bf16.mxu1 %vm602_vm2, %v3455_v5 }
  0xd5   : > { %3006 = vmatmul.mubr.msk.bf16.vlgmr.msra.gmra.mrb[84].mxu0 %vm602_vm2, %v3567_v35  ;;  %2984 = vmatmul.mubr.msk.bf16.gmra.mrb[88].mxu1 %vm602_vm2, %v3303_v61  ;;  %v1916_v61 = vshrl.u32 %v3691_v23, 16 }
  0xd6   : > { %3009 = vmatprep.mubr.msk.bf16.mxu0 %vm602_vm2, %v3614_v32  ;;  %2987 = vmatprep.mubr.msk.bf16.mxu1 %vm602_vm2, %v3313_v0  ;;  %v2074_v0 = vrot.slane %v3599_v57, 1 }
  0xd7   : > { %v1918_v21 = vor.u32 %v1916_v61, %v3705_v36 }
  0xd8   : > { %v2075_v25 = vsel %vm913_vm4, %v937_v7, %v2074_v0 }
  0xdd   : > { %3010 = vmatmul.mubr.msk.bf16.gmra.mrb[88].mxu0 %vm602_vm2, %v3617_v11  ;;  %2988 = vmatmul.mubr.msk.bf16.gmra.mrb[92].mxu1 %vm602_vm2, %v3342_v17  ;;  %v2076_v17 = vrot.slane %v3691_v23, 1 }
  0xde   : > { %3013 = vmatprep.mubr.msk.bf16.mxu0 %vm602_vm2, %v3630_v14  ;;  %2991 = vmatprep.mubr.msk.bf16.mxu1 %vm602_vm2, %v3376_v58  ;;  %v3123_v58 = vmov 0  }
  0xdf   : > { %v1922_v4 = vrot.slane %v3123_v58, 1 }
  0xe1   : > { %v2079_v48 = vsel %vm913_vm4, %v2076_v17, %v1922_v4 }
  0xe5   : > { %3014 = vmatmul.mubr.msk.bf16.gmra.mrb[92].mxu0 %vm602_vm2, %v3633_v63  ;;  %2992 = vmatmul.mubr.msk.bf16.gmra.mrb[96].mxu1 %vm602_vm2, %v3423_v27  ;;  %v1923_v27 = vsel %vm502_vm1, %v1918_v21, %v1922_v4 }
  0xe6   : > { %3017 = vmatprep.mubr.msk.bf16.mxu0 %vm602_vm2, %v3649_v15  ;;  %2995 = vmatprep.mubr.msk.bf16.mxu1 %vm602_vm2, %v3438_v41  ;;  %v2077_v41 = vsel %vm913_vm4, %v2074_v0, %v2076_v17 }
  0xed   : > { %3018 = vmatmul.mubr.msk.bf16.gmra.mrb[96].mxu0 %vm602_vm2, %v3652_v19  ;;  %2996 = vmatmul.mubr.msk.bf16.gmra.mrb[100].mxu1 %vm602_vm2, %v3694_v28 }
  0xee   : > { %3021 = vmatprep.mubr.msk.bf16.mxu0 %vm602_vm2, %v3670_v22  ;;  %2999 = vmatprep.mubr.msk.bf16.mxu1 %vm602_vm2, %v3719_v47 }
  0xf5   : > { %3022 = vmatmul.mubr.msk.bf16.gmra.mrb[100].mxu0 %vm602_vm2, %v2075_v25  ;;  %3000 = vmatmul.mubr.msk.bf16.gmra.mrb[104].mxu1 %vm602_vm2, %v1923_v27 }
  0xf6   : > { %3025 = vmatprep.mubr.msk.bf16.mxu0 %vm602_vm2, %v2077_v41 }
  0xf8   : > { %v2811_v42 = vpop.f32.mrb[0].mxu1 }
  0xf9   : > { %v3877_v5 = vpop.f32.mrb[1].mxu1 }
  0xfa   : > { %v3880_v35 = vpop.f32.mrb[2].mxu1 }
  0xfb   : > { %v3882_v20 = vpop.f32.mrb[3].mxu1 }
  0xfd   : > { %3026 = vmatmul.mubr.msk.bf16.gmra.mrb[104].mxu0 %vm602_vm2, %v2079_v48 }
 0x100   : > { %v2799_v57 = vpop.f32.mrb[0].mxu0  ;;  %v3885_v32 = vpop.f32.mrb[4].mxu1 }
 0x101   : > { %v676_v11 = vpop.f32.mrb[1].mxu0  ;;  %v3887_v14 = vpop.f32.mrb[5].mxu1 }
 0x102   : > { %v2800_v63 = vpop.f32.mrb[2].mxu0  ;;  %v3889_v15 = vpop.f32.mrb[6].mxu1 }
 0x103   : > { %v679_v19 = vpop.f32.mrb[3].mxu0  ;;  %v738_v7 = vpop.f32.mrb[7].mxu1 }
 0x108   : > { %v2803_v22 = vpop.f32.mrb[4].mxu0  ;;  %v3891_v28 = vpop.f32.mrb[8].mxu1 }
 0x109   : > { %v691_v23 = vpop.f32.mrb[5].mxu0  ;;  %v750_v47 = vpop.f32.mrb[9].mxu1 }
 0x10a   : > { %v2804_v36 = vpop.f32.mrb[6].mxu0  ;;  %v2820_v26 = vpop.f32.mrb[10].mxu1 }
 0x10b   : > { %v694_v34 = vpop.f32.mrb[7].mxu0  ;;  %v3893_v43 = vpop.f32.mrb[11].mxu1 }
 0x110   : > { %v2807_v33 = vpop.f32.mrb[8].mxu0  ;;  %v2825_v40 = vpop.f32.mrb[12].mxu1 }
 0x111   : > { %v706_v1 = vpop.f32.mrb[9].mxu0  ;;  %v824_v55 = vpop.f32.mrb[13].mxu1 }
 0x112   : > { %v2808_v37 = vpop.f32.mrb[10].mxu0  ;;  %v825_v38 = vadd.f32 %v824_v55, %v676_v11  ;;  %v2826_v31 = vpop.f32.mrb[14].mxu1 }
 0x113   : > { %v708_v56 = vpop.f32.mrb[11].mxu0  ;;  %v835_v10 = vadd.f32 %v2826_v31, %v2800_v63  ;;  %v827_v9 = vpop.f32.mrb[15].mxu1 }
 0x114   : > { %v828_v54 = vadd.f32 %v827_v9, %v679_v19 }
 0x118   : > { %v2851_v46 = vpop.f32.mrb[12].mxu0  ;;  %v2829_v24 = vpop.f32.mrb[16].mxu1 }
 0x119   : > { %v1012_v44 = vpop.f32.mrb[13].mxu0  ;;  %v847_v45 = vadd.f32 %v2829_v24, %v2803_v22  ;;  %v839_v50 = vpop.f32.mrb[17].mxu1 }
 0x11a   : > { %v3895_v49 = vadd.f32 %v1012_v44, %v825_v38  ;;  %v2852_v2 = vpop.f32.mrb[14].mxu0  ;;  %v840_v51 = vadd.f32 %v839_v50, %v691_v23  ;;  %v2830_v13 = vpop.f32.mrb[18].mxu1 }
 0x11b   : > { %v3897_v8 = vadd.f32 %v2852_v2, %v835_v10  ;;  %v1015_v16 = vpop.f32.mrb[15].mxu0  ;;  %v850_v12 = vadd.f32 %v2830_v13, %v2804_v36  ;;  %v842_v62 = vpop.f32.mrb[19].mxu1 }
 0x11c   : > { %v3899_v60 = vadd.f32 %v1015_v16, %v828_v54 }
 0x120   : > { %v2855_v18 = vpop.f32.mrb[16].mxu0  ;;  %v2833_v29 = vpop.f32.mrb[20].mxu1 }
 0x121   : > { %v3901_v3 = vadd.f32 %v2855_v18, %v847_v45  ;;  %v1027_v6 = vpop.f32.mrb[17].mxu0  ;;  %v862_v53 = vadd.f32 %v2833_v29, %v2807_v33  ;;  %v854_v39 = vpop.f32.mrb[21].mxu1 }
 0x122   : > { %v3903_v30 = vadd.f32 %v1027_v6, %v840_v51  ;;  %v2856_v59 = vpop.f32.mrb[18].mxu0  ;;  %v2834_v0 = vpop.f32.mrb[22].mxu1 }
 0x123   : > { %v3905_v52 = vadd.f32 %v2856_v59, %v850_v12  ;;  %v1030_v61 = vpop.f32.mrb[19].mxu0  ;;  %v856_v17 = vpop.f32.mrb[23].mxu1 }
 0x124   : > { %v857_v21 = vadd.f32 %v856_v17, %v708_v56 }
 0x128   : > { %v2859_v58 = vpop.f32.mrb[20].mxu0  ;;  %v2837_v27 = vpop.f32.mrb[24].mxu1 }
 0x129   : > { %v3907_v4 = vadd.f32 %v2859_v58, %v862_v53  ;;  %v1042_v25 = vpop.f32.mrb[21].mxu0  ;;  %v868_v42 = vpop.f32.mrb[25].mxu1 }
 0x12a   : > { %v2860_v41 = vpop.f32.mrb[22].mxu0  ;;  %v869_v57 = vadd.f32 %v868_v42, %v3877_v5  ;;  %v2838_v11 = vpop.f32.mrb[26].mxu1 }
 0x12b   : > { %v1044_v48 = vpop.f32.mrb[23].mxu0  ;;  %v879_v19 = vadd.f32 %v2838_v11, %v3880_v35  ;;  %v871_v7 = vpop.f32.mrb[27].mxu1 }
 0x12c   : > { %v3910_v63 = vadd.f32 %v1044_v48, %v857_v21  ;;  %v872_v22 = vadd.f32 %v871_v7, %v3882_v20 }
 0x130   : > { %v2863_v23 = vpop.f32.mrb[24].mxu0  ;;  %v2841_v47 = vpop.f32.mrb[28].mxu1 }
 0x131   : > { %v1056_v36 = vpop.f32.mrb[25].mxu0  ;;  %v891_v33 = vadd.f32 %v2841_v47, %v3885_v32  ;;  %v883_v1 = vpop.f32.mrb[29].mxu1 }
 0x132   : > { %v3914_v34 = vadd.f32 %v1056_v36, %v869_v57  ;;  %v2864_v26 = vpop.f32.mrb[26].mxu0  ;;  %v884_v37 = vadd.f32 %v883_v1, %v3887_v14  ;;  %v2842_v55 = vpop.f32.mrb[30].mxu1 }
 0x133   : > { %v3917_v40 = vadd.f32 %v2864_v26, %v879_v19  ;;  %v1059_v5 = vpop.f32.mrb[27].mxu0  ;;  %v894_v35 = vadd.f32 %v2842_v55, %v3889_v15  ;;  %v886_v20 = vpop.f32.mrb[31].mxu1 }
 0x134   : > { %v3920_v56 = vadd.f32 %v1059_v5, %v872_v22 }
 0x138   : > { %v2867_v38 = vpop.f32.mrb[28].mxu0  ;;  %v2845_v9 = vpop.f32.mrb[32].mxu1 }
 0x139   : > { %v3923_v31 = vadd.f32 %v2867_v38, %v891_v33  ;;  %v1071_v10 = vpop.f32.mrb[29].mxu0  ;;  %v906_v46 = vadd.f32 %v2845_v9, %v3891_v28  ;;  %v898_v44 = vpop.f32.mrb[33].mxu1 }
 0x13a   : > { %v3925_v54 = vadd.f32 %v1071_v10, %v884_v37  ;;  %v2868_v32 = vpop.f32.mrb[30].mxu0  ;;  %v2846_v2 = vpop.f32.mrb[34].mxu1 }
 0x13b   : > { %v3928_v24 = vadd.f32 %v2868_v32, %v894_v35  ;;  %v1074_v14 = vpop.f32.mrb[31].mxu0  ;;  %v900_v45 = vpop.f32.mrb[35].mxu1 }
 0x13c   : > { %v901_v50 = vadd.f32 %v900_v45, %v3893_v43 }
 0x140   : > { %v2871_v15 = vpop.f32.mrb[32].mxu0  ;;  %v2877_v13 = vpop.f32.mrb[36].mxu1 }
 0x141   : > { %v3931_v16 = vadd.f32 %v2871_v15, %v906_v46  ;;  %v1086_v51 = vpop.f32.mrb[33].mxu0  ;;  %v1218_v62 = vpop.f32.mrb[37].mxu1 }
 0x142   : > { %v2872_v12 = vpop.f32.mrb[34].mxu0  ;;  %v1305_v6 = vadd.f32 %v1218_v62, %v3895_v49  ;;  %v2878_v29 = vpop.f32.mrb[38].mxu1 }
 0x143   : > { %v1088_v18 = vpop.f32.mrb[35].mxu0  ;;  %v1307_v59 = vadd.f32 %v2878_v29, %v3897_v8  ;;  %v1221_v53 = vpop.f32.mrb[39].mxu1 }
 0x144   : > { %v3934_v28 = vadd.f32 %v1088_v18, %v901_v50  ;;  %v1306_v39 = vadd.f32 %v1221_v53, %v3899_v60 }
 0x148   : > { %v2903_v61 = vpop.f32.mrb[36].mxu0  ;;  %v2881_v0 = vpop.f32.mrb[40].mxu1 }
 0x149   : > { %v1452_v43 = vpop.f32.mrb[37].mxu0  ;;  %v1309_v58 = vadd.f32 %v2881_v0, %v3901_v3  ;;  %v1233_v25 = vpop.f32.mrb[41].mxu1 }
 0x14a   : > { %v3938_v17 = vadd.f32 %v1452_v43, %v1305_v6  ;;  %v2904_v21 = vpop.f32.mrb[38].mxu0  ;;  %v1308_v41 = vadd.f32 %v1233_v25, %v3903_v30  ;;  %v2882_v42 = vpop.f32.mrb[42].mxu1 }
 0x14b   : > { %v3941_v27 = vadd.f32 %v2904_v21, %v1307_v59  ;;  %v1455_v49 = vpop.f32.mrb[39].mxu0  ;;  %v1310_v8 = vadd.f32 %v2882_v42, %v3905_v52  ;;  %v1236_v60 = vpop.f32.mrb[43].mxu1 }
 0x14c   : > { %v3944_v48 = vadd.f32 %v1455_v49, %v1306_v39 }
 0x150   : > { %v2907_v57 = vpop.f32.mrb[40].mxu0  ;;  %v2885_v7 = vpop.f32.mrb[44].mxu1 }
 0x151   : > { %v3947_v11 = vadd.f32 %v2907_v57, %v1309_v58  ;;  %v1467_v19 = vpop.f32.mrb[41].mxu0  ;;  %v1312_v23 = vadd.f32 %v2885_v7, %v3907_v4  ;;  %v1248_v36 = vpop.f32.mrb[45].mxu1 }
 0x152   : > { %v3949_v22 = vadd.f32 %v1467_v19, %v1308_v41  ;;  %v2908_v3 = vpop.f32.mrb[42].mxu0  ;;  %v2886_v26 = vpop.f32.mrb[46].mxu1 }
 0x153   : > { %v3952_v47 = vadd.f32 %v2908_v3, %v1310_v8  ;;  %v1470_v30 = vpop.f32.mrb[43].mxu0  ;;  %v1250_v33 = vpop.f32.mrb[47].mxu1 }
 0x154   : > { %v1311_v1 = vadd.f32 %v1250_v33, %v3910_v63 }
 0x158   : > { %v2911_v52 = vpop.f32.mrb[44].mxu0  ;;  %v2889_v55 = vpop.f32.mrb[48].mxu1 }
 0x159   : > { %v3955_v5 = vadd.f32 %v2911_v52, %v1312_v23  ;;  %v1482_v37 = vpop.f32.mrb[45].mxu0  ;;  %v1262_v20 = vpop.f32.mrb[49].mxu1 }
 0x15a   : > { %v2912_v35 = vpop.f32.mrb[46].mxu0  ;;  %v1313_v10 = vadd.f32 %v1262_v20, %v3914_v34  ;;  %v2890_v9 = vpop.f32.mrb[50].mxu1 }
 0x15b   : > { %v1484_v38 = vpop.f32.mrb[47].mxu0  ;;  %v1315_v32 = vadd.f32 %v2890_v9, %v3917_v40  ;;  %v1265_v46 = vpop.f32.mrb[51].mxu1 }
 0x15c   : > { %v3958_v4 = vadd.f32 %v1484_v38, %v1311_v1  ;;  %v1314_v44 = vadd.f32 %v1265_v46, %v3920_v56 }
 0x160   : > { %v2915_v14 = vpop.f32.mrb[48].mxu0  ;;  %v2893_v2 = vpop.f32.mrb[52].mxu1 }
 0x161   : > { %v1496_v63 = vpop.f32.mrb[49].mxu0  ;;  %v1317_v15 = vadd.f32 %v2893_v2, %v3923_v31  ;;  %v1277_v51 = vpop.f32.mrb[53].mxu1 }
 0x162   : > { %v3962_v45 = vadd.f32 %v1496_v63, %v1313_v10  ;;  %v2916_v50 = vpop.f32.mrb[50].mxu0  ;;  %v1316_v12 = vadd.f32 %v1277_v51, %v3925_v54  ;;  %v2894_v62 = vpop.f32.mrb[54].mxu1 }
 0x163   : > { %v3965_v13 = vadd.f32 %v2916_v50, %v1315_v32  ;;  %v1499_v34 = vpop.f32.mrb[51].mxu0  ;;  %v1318_v40 = vadd.f32 %v2894_v62, %v3928_v24  ;;  %v1280_v56 = vpop.f32.mrb[55].mxu1 }
 0x164   : > { %v3968_v18 = vadd.f32 %v1499_v34, %v1314_v44 }
 0x168   : > { %v2919_v6 = vpop.f32.mrb[52].mxu0  ;;  %v2897_v53 = vpop.f32.mrb[56].mxu1 }
 0x169   : > { %v3971_v29 = vadd.f32 %v2919_v6, %v1317_v15  ;;  %v1511_v59 = vpop.f32.mrb[53].mxu0  ;;  %v1320_v61 = vadd.f32 %v2897_v53, %v3931_v16  ;;  %v1292_v43 = vpop.f32.mrb[57].mxu1 }
 0x16a   : > { %v3973_v39 = vadd.f32 %v1511_v59, %v1316_v12  ;;  %v2920_v31 = vpop.f32.mrb[54].mxu0  ;;  %v2898_v21 = vpop.f32.mrb[58].mxu1 }
 0x16b   : > { %v3976_v0 = vadd.f32 %v2920_v31, %v1318_v40  ;;  %v1514_v54 = vpop.f32.mrb[55].mxu0  ;;  %v1294_v58 = vpop.f32.mrb[59].mxu1 }
 0x16c   : > { %v1319_v25 = vadd.f32 %v1294_v58, %v3934_v28 }
 0x170   : > { %v2923_v24 = vpop.f32.mrb[56].mxu0  ;;  %v2929_v42 = vpop.f32.mrb[60].mxu1 }
 0x171   : > { %v3979_v49 = vadd.f32 %v2923_v24, %v1320_v61  ;;  %v1526_v41 = vpop.f32.mrb[57].mxu0  ;;  %v1654_v60 = vpop.f32.mrb[61].mxu1 }
 0x172   : > { %v2924_v8 = vpop.f32.mrb[58].mxu0  ;;  %v1741_v19 = vadd.f32 %v1654_v60, %v3938_v17  ;;  %v2930_v7 = vpop.f32.mrb[62].mxu1 }
 0x173   : > { %v1528_v57 = vpop.f32.mrb[59].mxu0  ;;  %v1743_v3 = vadd.f32 %v2930_v7, %v3941_v27  ;;  %v1657_v23 = vpop.f32.mrb[63].mxu1 }
 0x174   : > { %v3982_v16 = vadd.f32 %v1528_v57, %v1319_v25  ;;  %v1742_v36 = vadd.f32 %v1657_v23, %v3944_v48 }
 0x178   : > { %v2955_v30 = vpop.f32.mrb[60].mxu0  ;;  %v2933_v26 = vpop.f32.mrb[64].mxu1 }
 0x179   : > { %v1805_v28 = vpop.f32.mrb[61].mxu0  ;;  %v1745_v52 = vadd.f32 %v2933_v26, %v3947_v11  ;;  %v1669_v37 = vpop.f32.mrb[65].mxu1 }
 0x17a   : > { %v3986_v33 = vadd.f32 %v1805_v28, %v1741_v19  ;;  %v2956_v1 = vpop.f32.mrb[62].mxu0  ;;  %v1744_v35 = vadd.f32 %v1669_v37, %v3949_v22  ;;  %v2934_v20 = vpop.f32.mrb[66].mxu1 }
 0x17b   : > { %v3989_v55 = vadd.f32 %v2956_v1, %v1743_v3  ;;  %v1808_v17 = vpop.f32.mrb[63].mxu0  ;;  %v1746_v27 = vadd.f32 %v2934_v20, %v3952_v47  ;;  %v1672_v48 = vpop.f32.mrb[67].mxu1 }
 0x17c   : > { %v3992_v38 = vadd.f32 %v1808_v17, %v1742_v36 }
 0x180   : > { %v2959_v10 = vpop.f32.mrb[64].mxu0  ;;  %v2937_v46 = vpop.f32.mrb[68].mxu1 }
 0x181   : > { %v3995_v9 = vadd.f32 %v2959_v10, %v1745_v52  ;;  %v1820_v32 = vpop.f32.mrb[65].mxu0  ;;  %v1748_v14 = vadd.f32 %v2937_v46, %v3955_v5  ;;  %v1684_v63 = vpop.f32.mrb[69].mxu1 }
 0x182   : > { %v3997_v44 = vadd.f32 %v1820_v32, %v1744_v35  ;;  %v2960_v11 = vpop.f32.mrb[66].mxu0  ;;  %v2938_v50 = vpop.f32.mrb[70].mxu1 }
 0x183   : > { %v4000_v2 = vadd.f32 %v2960_v11, %v1746_v27  ;;  %v1823_v22 = vpop.f32.mrb[67].mxu0  ;;  %v1686_v15 = vpop.f32.mrb[71].mxu1  ;;  %v4037_v50 = vld [vmem:[%s4159_s4] ss:$0 sm:$0xff] }
 0x184   : > { %v1747_v51 = vadd.f32 %v1686_v15, %v3958_v4 }
 0x188   : > { %v2963_v47 = vpop.f32.mrb[68].mxu0  ;;  %v2941_v62 = vpop.f32.mrb[72].mxu1 }
 0x189   : > { %v4003_v34 = vadd.f32 %v2963_v47, %v1748_v14  ;;  %v1835_v12 = vpop.f32.mrb[69].mxu0  ;;  %v1698_v56 = vpop.f32.mrb[73].mxu1 }
 0x18a   : > { %v2964_v40 = vpop.f32.mrb[70].mxu0  ;;  %v1749_v59 = vadd.f32 %v1698_v56, %v3962_v45  ;;  %v2942_v53 = vpop.f32.mrb[74].mxu1 }
 0x18b   : > { %v1837_v6 = vpop.f32.mrb[71].mxu0  ;;  %v1751_v31 = vadd.f32 %v2942_v53, %v3965_v13  ;;  %v1701_v61 = vpop.f32.mrb[75].mxu1 }
 0x18c   : > { %v4006_v5 = vadd.f32 %v1837_v6, %v1747_v51  ;;  %v1750_v43 = vadd.f32 %v1701_v61, %v3968_v18 }
 0x190   : > { %v2967_v54 = vpop.f32.mrb[72].mxu0  ;;  %v2945_v21 = vpop.f32.mrb[76].mxu1 }
 0x191   : > { %v1849_v4 = vpop.f32.mrb[73].mxu0  ;;  %v1753_v24 = vadd.f32 %v2945_v21, %v3971_v29  ;;  %v1713_v41 = vpop.f32.mrb[77].mxu1 }
 0x192   : > { %v4010_v58 = vadd.f32 %v1849_v4, %v1749_v59  ;;  %v2968_v25 = vpop.f32.mrb[74].mxu0  ;;  %v1752_v8 = vadd.f32 %v1713_v41, %v3973_v39  ;;  %v2946_v60 = vpop.f32.mrb[78].mxu1 }
 0x193   : > { %v4013_v42 = vadd.f32 %v2968_v25, %v1751_v31  ;;  %v1852_v45 = vpop.f32.mrb[75].mxu0  ;;  %v1754_v13 = vadd.f32 %v2946_v60, %v3976_v0  ;;  %v1716_v18 = vpop.f32.mrb[79].mxu1 }
 0x194   : > { %v4016_v57 = vadd.f32 %v1852_v45, %v1750_v43 }
 0x198   : > { %v2971_v19 = vpop.f32.mrb[76].mxu0  ;;  %v2949_v23 = vpop.f32.mrb[80].mxu1 }
 0x199   : > { %v4019_v7 = vadd.f32 %v2971_v19, %v1753_v24  ;;  %v1864_v3 = vpop.f32.mrb[77].mxu0  ;;  %v1756_v30 = vadd.f32 %v2949_v23, %v3979_v49  ;;  %v1728_v28 = vpop.f32.mrb[81].mxu1 }
 0x19a   : > { %v4021_v36 = vadd.f32 %v1864_v3, %v1752_v8  ;;  %v2972_v29 = vpop.f32.mrb[78].mxu0  ;;  %v2950_v1 = vpop.f32.mrb[82].mxu1 }
 0x19b   : > { %v4024_v26 = vadd.f32 %v2972_v29, %v1754_v13  ;;  %v1867_v39 = vpop.f32.mrb[79].mxu0  ;;  %v1730_v52 = vpop.f32.mrb[83].mxu1 }
 0x19c   : > { %v1755_v37 = vadd.f32 %v1730_v52, %v3982_v16 }
 0x1a0   : > { %v2975_v0 = vpop.f32.mrb[80].mxu0  ;;  %v2981_v20 = vpop.f32.mrb[84].mxu1 }
 0x1a1   : > { %v4027_v17 = vadd.f32 %v2975_v0, %v1756_v30  ;;  %v1879_v35 = vpop.f32.mrb[81].mxu0  ;;  %v1970_v48 = vpop.f32.mrb[85].mxu1 }
 0x1a2   : > { %v2976_v27 = vpop.f32.mrb[82].mxu0  ;;  %v2057_v32 = vadd.f32 %v1970_v48, %v3986_v33  ;;  %v2982_v46 = vpop.f32.mrb[86].mxu1 }
 0x1a3   : > { %v1881_v10 = vpop.f32.mrb[83].mxu0  ;;  %v2059_v11 = vadd.f32 %v2982_v46, %v3989_v55  ;;  %v1973_v14 = vpop.f32.mrb[87].mxu1 }
 0x1a4   : > { %v4030_v49 = vadd.f32 %v1881_v10, %v1755_v37  ;;  %v2058_v63 = vadd.f32 %v1973_v14, %v3992_v38 }
 0x1a8   : > { %v3007_v22 = vpop.f32.mrb[84].mxu0  ;;  %v2985_v15 = vpop.f32.mrb[88].mxu1 }
 0x1a9   : > { %v2126_v16 = vpop.f32.mrb[85].mxu0  ;;  %v2061_v33 = vadd.f32 %v2985_v15, %v3995_v9  ;;  %v1985_v12 = vpop.f32.mrb[89].mxu1 }
 0x1aa   : > { %v2213_v51 = vadd.f32 %v2126_v16, %v2057_v32  ;;  %v3008_v47 = vpop.f32.mrb[86].mxu0  ;;  %v2060_v55 = vadd.f32 %v1985_v12, %v3997_v44  ;;  %v2986_v56 = vpop.f32.mrb[90].mxu1 }
 0x1ab   : > { %v2215_v62 = vadd.f32 %v3008_v47, %v2059_v11  ;;  %v2129_v40 = vpop.f32.mrb[87].mxu0  ;;  %v2062_v59 = vadd.f32 %v2986_v56, %v4000_v2  ;;  %v1988_v53 = vpop.f32.mrb[91].mxu1 }
 0x1ac   : > { %v2236_v38 = vadd.f32 %v4037_v50, %v2213_v51  ;;  %v2214_v6 = vadd.f32 %v2129_v40, %v2058_v63 }
 0x1ad   : > { %v2238_v31 = vadd.f32 %v4037_v50, %v2215_v62 }
 0x1ae   : > { %v2252_v61 = vmax.f32 %v2236_v38, 0.0  ;;  %v2237_v9 = vadd.f32 %v4037_v50, %v2214_v6 }
 0x1af   : > { %v2254_v43 = vmax.f32 %v2238_v31, 0.0 }
 0x1b0   : > { %v2269_v54 = vsel %vm2268_vm8, %v2252_v61, -inf  ;;  %v3011_v4 = vpop.f32.mrb[88].mxu0  ;;  %v2989_v24 = vpop.f32.mrb[92].mxu1  ;;  %v2253_v3 = vmax.f32 %v2237_v9, 0.0 }
 0x1b1   : > { %v2270_v21 = vsel %vm2268_vm8, %v2254_v43, -inf  ;;  %v2217_v44 = vadd.f32 %v3011_v4, %v2061_v33  ;;  %v2141_v25 = vpop.f32.mrb[89].mxu0  ;;  %v2064_v2 = vadd.f32 %v2989_v24, %v4003_v34  ;;  %v2000_v60 = vpop.f32.mrb[93].mxu1 }
 0x1b2   : > { %v2271_v41 = vmax.f32 %v2269_v54, %v2270_v21  ;;  %v2216_v45 = vadd.f32 %v2141_v25, %v2060_v55  ;;  %v3012_v8 = vpop.f32.mrb[90].mxu0  ;;  %v2990_v19 = vpop.f32.mrb[94].mxu1  ;;  %v2272_v1 = vsel %vm2268_vm8, %v2253_v3, -inf }
 0x1b3   : > { %v2218_v13 = vadd.f32 %v3012_v8, %v2062_v59  ;;  %v2144_v18 = vpop.f32.mrb[91].mxu0  ;;  %v2002_v29 = vpop.f32.mrb[95].mxu1  ;;  %v2240_v37 = vadd.f32 %v4037_v50, %v2217_v44 }
 0x1b4   : > { %2293 = vst.msk [vmem:[#allocation2] sm:$0xff] %vm2268_vm8, %v2271_v41  ;;  %v2239_v23 = vadd.f32 %v4037_v50, %v2216_v45  ;;  %v2063_v30 = vadd.f32 %v2002_v29, %v4006_v5 }
 0x1b5   : > { %v2241_v39 = vadd.f32 %v4037_v50, %v2218_v13  ;;  %v2256_v15 = vmax.f32 %v2240_v37, 0.0 }
 0x1b6   : > { %v2255_v28 = vmax.f32 %v2239_v23, 0.0 }
 0x1b7   : > { %v2257_v32 = vmax.f32 %v2241_v39, 0.0 }
 0x1b8   : > { %v2273_v52 = vsel %vm2268_vm8, %v2255_v28, -inf  ;;  %v3015_v34 = vpop.f32.mrb[92].mxu0  ;;  %v2993_v27 = vpop.f32.mrb[96].mxu1 }
 0x1b9   : > { %v2274_v0 = vmax.f32 %v2272_v1, %v2273_v52  ;;  %v2220_v35 = vadd.f32 %v3015_v34, %v2064_v2  ;;  %v2156_v20 = vpop.f32.mrb[93].mxu0  ;;  %v2014_v10 = vpop.f32.mrb[97].mxu1  ;;  %v2278_v12 = vsel %vm2268_vm8, %v2257_v32, -inf }
 0x1ba   : > { %v3016_v48 = vpop.f32.mrb[94].mxu0  ;;  %v2065_v11 = vadd.f32 %v2014_v10, %v4010_v58  ;;  %v2994_v14 = vpop.f32.mrb[98].mxu1  ;;  %v2275_v58 = vsel %vm2268_vm8, %v2256_v15, -inf }
 0x1bb   : > { %2294 = vst.msk [vmem:[#allocation2 + $0x8] sm:$0xff] %vm2268_vm8, %v2274_v0  ;;  %v2243_v5 = vadd.f32 %v4037_v50, %v2220_v35  ;;  %v2158_v46 = vpop.f32.mrb[95].mxu0  ;;  %v2067_v22 = vadd.f32 %v2994_v14, %v4013_v42  ;;  %v2017_v16 = vpop.f32.mrb[99].mxu1 }
 0x1bc   : > { %v2219_v63 = vadd.f32 %v2158_v46, %v2063_v30  ;;  %v2066_v47 = vadd.f32 %v2017_v16, %v4016_v57 }
 0x1bd   : > { %v2259_v51 = vmax.f32 %v2243_v5, 0.0 }
 0x1be   : > { %v2242_v33 = vadd.f32 %v4037_v50, %v2219_v63 }
 0x1bf   : > { %v2279_v62 = vsel %vm2268_vm8, %v2259_v51, -inf }
 0x1c0   : > { %v2280_v40 = vmax.f32 %v2278_v12, %v2279_v62  ;;  %v2258_v55 = vmax.f32 %v2242_v33, 0.0  ;;  %v3019_v56 = vpop.f32.mrb[96].mxu0  ;;  %v2997_v6 = vpop.f32.mrb[100].mxu1 }
 0x1c1   : > { %v2170_v38 = vpop.f32.mrb[97].mxu0  ;;  %v2069_v61 = vadd.f32 %v2997_v6, %v4019_v7  ;;  %v2029_v21 = vpop.f32.mrb[101].mxu1 }
 0x1c2   : > { %v2301_v59 = vld [vmem:[#allocation2] ss:$2 sm:$0xff]  ;;  %v2309_v42 = vld [vmem:[#allocation2 + $0x1] ss:$2 sm:$0xff]  ;;  %2296 = vst.msk [vmem:[#allocation2 + $0x18] sm:$0xff] %vm2268_vm8, %v2280_v40  ;;  %v2276_v53 = vsel %vm2268_vm8, %v2258_v55, -inf  ;;  %v2221_v57 = vadd.f32 %v2170_v38, %v2065_v11  ;;  %v2068_v24 = vadd.f32 %v2029_v21, %v4021_v36 }
 0x1c3   : > { %v3020_v31 = vpop.f32.mrb[98].mxu0  ;;  %v2316_v43 = vmax.f32 %v2301_v59, %v2309_v42  ;;  %v2277_v54 = vmax.f32 %v2275_v58, %v2276_v53  ;;  %v2998_v41 = vpop.f32.mrb[102].mxu1 }
 0x1c4   : > { %v2223_v9 = vadd.f32 %v3020_v31, %v2067_v22  ;;  %v2173_v4 = vpop.f32.mrb[99].mxu0  ;;  %v2244_v44 = vadd.f32 %v4037_v50, %v2221_v57  ;;  %v2070_v2 = vadd.f32 %v2998_v41, %v4024_v26  ;;  %v2032_v60 = vpop.f32.mrb[103].mxu1 }
 0x1c5   : > { %v2222_v25 = vadd.f32 %v2173_v4, %v2066_v47  ;;  %v2320_v45 = vpack.c.bf16 %v2316_v43, %v2316_v43  ;;  %2295 = vst.msk [vmem:[#allocation2 + $0x10] sm:$0xff] %vm2268_vm8, %v2277_v54 }
 0x1c6   : > { %v2246_v8 = vadd.f32 %v4037_v50, %v2223_v9  ;;  %v2260_v7 = vmax.f32 %v2244_v44, 0.0 }
 0x1c7   : > { %v2325_v13 = vshrl.u32 %v2320_v45, 16  ;;  %v2245_v36 = vadd.f32 %v4037_v50, %v2222_v25  ;;  %v2328_v29 = vshll.u32 %v2320_v45, 16 }
 0x1c8   : > { %v2262_v18 = vmax.f32 %v2246_v8, 0.0  ;;  %v2281_v19 = vsel %vm2268_vm8, %v2260_v7, -inf  ;;  %v3023_v3 = vpop.f32.mrb[100].mxu0  ;;  %v3001_v39 = vpop.f32.mrb[104].mxu1 }
 0x1c9   : > { %v2327_v23 = vrot.slane %v2325_v13, 7  ;;  %v2225_v28 = vadd.f32 %v3023_v3, %v2069_v61  ;;  %v2185_v26 = vpop.f32.mrb[101].mxu0  ;;  %v2072_v0 = vadd.f32 %v3001_v39, %v4027_v17  ;;  %v2044_v35 = vpop.f32.mrb[105].mxu1  ;;  %v2261_v11 = vmax.f32 %v2245_v36, 0.0 }
 0x1ca   : > { %v2282_v30 = vsel %vm2268_vm8, %v2262_v18, -inf  ;;  %v2224_v34 = vadd.f32 %v2185_v26, %v2068_v24  ;;  %v3024_v37 = vpop.f32.mrb[102].mxu0  ;;  %v3002_v32 = vpop.f32.mrb[106].mxu1 }
 0x1cb   : > { %v2283_v52 = vmax.f32 %v2281_v19, %v2282_v30  ;;  %v2330_v20 = vor.u32 %v2328_v29, %v2327_v23  ;;  %v2226_v48 = vadd.f32 %v3024_v37, %v2070_v2  ;;  %v2188_v10 = vpop.f32.mrb[103].mxu0  ;;  %v2046_v17 = vpop.f32.mrb[107].mxu1  ;;  %v2284_v40 = vsel %vm2268_vm8, %v2261_v11, -inf }
 0x1cc   : > { %v2303_v5 = vld [vmem:[#allocation2 + $0x10] ss:$2 sm:$0xff]  ;;  %v2311_v46 = vld [vmem:[#allocation2 + $0x11] ss:$2 sm:$0xff]  ;;  %v2247_v14 = vadd.f32 %v4037_v50, %v2224_v34  ;;  %v2071_v51 = vadd.f32 %v2046_v17, %v4030_v49  ;;  %v2248_v49 = vadd.f32 %v4037_v50, %v2225_v28 }
 0x1cd   : > { %2297 = vst.msk [vmem:[#allocation2 + $0x20] sm:$0xff] %vm2268_vm8, %v2283_v52  ;;  %v2359_v63 = vsel %vm4075_vm13, 0, %v2330_v20  ;;  %v2317_v22 = vmax.f32 %v2303_v5, %v2311_v46  ;;  %v2249_v62 = vadd.f32 %v4037_v50, %v2226_v48 }
 0x1ce   : > { %v2366_v16 = vsel %vm4083_vm14, %v2359_v63, 0  ;;  %v2263_v15 = vmax.f32 %v2247_v14, 0.0  ;;  %v2264_v21 = vmax.f32 %v2248_v49, 0.0 }
 0x1cf   : > { %v2668_v47 = vcombine.low %v2366_v16, %v2366_v16  ;;  %v2669_v33 = vcombine.high %v2366_v16, %v2366_v16  ;;  %v2321_v12 = vpack.c.bf16 %v2317_v22, %v2317_v22  ;;  %v2265_v31 = vmax.f32 %v2249_v62, 0.0 }
 0x1d0   : > { %v2285_v55 = vsel %vm2268_vm8, %v2263_v15, -inf  ;;  %v3027_v56 = vpop.f32.mrb[104].mxu0  ;;  %v2287_v13 = vsel %vm2268_vm8, %v2264_v21, -inf }
 0x1d1   : > { %2399 = vst.msk [vmem:[%s4094_s11] sm:$0xf] %vm2398_vm15, %v2668_v47  ;;  %2400 = vst.msk [vmem:[%s4094_s11 + $0x4] sm:$0xf] %vm2398_vm15, %v2669_v33  ;;  %v2332_v58 = vshrl.u32 %v2321_v12, 16  ;;  %v2286_v38 = vmax.f32 %v2284_v40, %v2285_v55  ;;  %v2228_v6 = vadd.f32 %v3027_v56, %v2072_v0  ;;  %v2200_v59 = vpop.f32.mrb[105].mxu0 }
 0x1d2   : > { %v3028_v42 = vpop.f32.mrb[106].mxu0  ;;  %v2335_v57 = vshll.u32 %v2321_v12, 16  ;;  %v2290_v24 = vsel %vm2268_vm8, %v2265_v31, -inf }
 0x1d3   : > { %v2334_v53 = vrot.slane %v2332_v58, 7  ;;  %2298 = vst.msk [vmem:[#allocation2 + $0x28] sm:$0xff] %vm2268_vm8, %v2286_v38  ;;  %v2251_v61 = vadd.f32 %v4037_v50, %v2228_v6  ;;  %v2202_v43 = vpop.f32.mrb[107].mxu0 }
 0x1d4   : > { %v2227_v54 = vadd.f32 %v2202_v43, %v2071_v51 }
 0x1d5   : > { %v2337_v9 = vor.u32 %v2335_v57, %v2334_v53  ;;  %v2267_v4 = vmax.f32 %v2251_v61, 0.0 }
 0x1d6   : > { %v2250_v44 = vadd.f32 %v4037_v50, %v2227_v54 }
 0x1d7   : > { %v2360_v25 = vsel %vm4075_vm13, 0, %v2337_v9  ;;  %v2291_v41 = vsel %vm2268_vm8, %v2267_v4, -inf }
 0x1d8   : > { %v2367_v45 = vsel %vm4083_vm14, %v2360_v25, 0  ;;  %v2292_v8 = vmax.f32 %v2290_v24, %v2291_v41  ;;  %v2266_v2 = vmax.f32 %v2250_v44, 0.0 }
 0x1d9   : > { %v2670_v60 = vcombine.low %v2367_v45, %v2367_v45  ;;  %v2671_v7 = vcombine.high %v2367_v45, %v2367_v45 }
 0x1da   : > { %v2305_v18 = vld [vmem:[#allocation2 + $0x20] ss:$2 sm:$0xff]  ;;  %v2313_v19 = vld [vmem:[#allocation2 + $0x21] ss:$2 sm:$0xff]  ;;  %2300 = vst.msk [vmem:[#allocation2 + $0x38] sm:$0xff] %vm2268_vm8, %v2292_v8  ;;  %v2288_v50 = vsel %vm2268_vm8, %v2266_v2, -inf }
 0x1db   : > { %2401 = vst.msk [vmem:[%s4094_s11 + $0x8] sm:$0xf] %vm2398_vm15, %v2670_v60  ;;  %2402 = vst.msk [vmem:[%s4094_s11 + $0xc] sm:$0xf] %vm2398_vm15, %v2671_v7  ;;  %v2318_v36 = vmax.f32 %v2305_v18, %v2313_v19  ;;  %v2289_v3 = vmax.f32 %v2287_v13, %v2288_v50 }
 0x1dd   : > { %v2322_v23 = vpack.c.bf16 %v2318_v36, %v2318_v36  ;;  %2299 = vst.msk [vmem:[#allocation2 + $0x30] sm:$0xff] %vm2268_vm8, %v2289_v3 }
 0x1df   : > { %v2339_v29 = vshrl.u32 %v2322_v23, 16  ;;  %v2342_v28 = vshll.u32 %v2322_v23, 16 }
 0x1e1   : > { %v2341_v30 = vrot.slane %v2339_v29, 7 }
 0x1e3   : > { %v2344_v26 = vor.u32 %v2342_v28, %v2341_v30 }
 0x1e4   : > { %v2307_v39 = vld [vmem:[#allocation2 + $0x30] ss:$2 sm:$0xff]  ;;  %v2315_v52 = vld [vmem:[#allocation2 + $0x31] ss:$2 sm:$0xff] }
 0x1e5   : > { %v2361_v34 = vsel %vm4075_vm13, 0, %v2344_v26  ;;  %v2319_v37 = vmax.f32 %v2307_v39, %v2315_v52 }
 0x1e6   : > { %v2368_v0 = vsel %vm4083_vm14, %v2361_v34, 0 }
 0x1e7   : > { %v2672_v35 = vcombine.low %v2368_v0, %v2368_v0  ;;  %v2673_v20 = vcombine.high %v2368_v0, %v2368_v0  ;;  %v2323_v48 = vpack.c.bf16 %v2319_v37, %v2319_v37 }
 0x1e9   : > { %2403 = vst.msk [vmem:[%s4094_s11 + $0x10] sm:$0xf] %vm2398_vm15, %v2672_v35  ;;  %2404 = vst.msk [vmem:[%s4094_s11 + $0x14] sm:$0xf] %vm2398_vm15, %v2673_v20  ;;  %v2346_v10 = vshrl.u32 %v2323_v48, 16  ;;  %v2349_v5 = vshll.u32 %v2323_v48, 16 }
 0x1eb   : > { %v2348_v32 = vrot.slane %v2346_v10, 7 }
 0x1ed   : > { %v2351_v46 = vor.u32 %v2349_v5, %v2348_v32 }
 0x1ef   : > { %v2362_v11 = vsel %vm4075_vm13, 0, %v2351_v46 }
 0x1f0   : > { %v2369_v14 = vsel %vm4083_vm14, %v2362_v11, 0 }
 0x1f1   : > { %v2674_v17 = vcombine.low %v2369_v14, %v2369_v14  ;;  %v2675_v63 = vcombine.high %v2369_v14, %v2369_v14 }
 0x1f3   : > { %2405 = vst.msk [vmem:[%s4094_s11 + $0x18] sm:$0xf] %vm2398_vm15, %v2674_v17  ;;  %2406 = vst.msk [vmem:[%s4094_s11 + $0x1c] sm:$0xf] %vm2398_vm15, %v2675_v63 }
 0x1f4 PF: > { %s15_s22 = sadd.s32 1, %s3121_s22   ;;  %s4167_s18 = smov %s3113_s20 }
 0x1f5   : > { %p12_p0 = scmp.ge.s32.totalorder %s15_s22, 10   ;;  %s4168_s19 = smov %s3117_s21 }
 0x1f6   : > { %s4169_s20 = smov %s4172_s23  ;;  %s4170_s21 = smov %s4176_s24 }
 0x1f7   :  { %14 = sbr.rel (!%p12_p0) target bundleno = 3 (0x3), region = 85 }

</bundles_post_ra>
